<compile_context>
chip_gen: v6e
topology: v6e:2x2x1
jax: 0.10.0
libtpu: 0.0.40
codegen_flags: <defaults>
</compile_context>

<pallas_src>
import functools

import jax
import jax.numpy as jnp
from jax.experimental import pallas as pl
from jax.experimental.pallas import tpu as pltpu

# ---------------------------------------------------------------------------
# Architecture constants (from EncoderBase)
# ---------------------------------------------------------------------------
PLANES = (32, 64, 128, 256)
LAYERS = (2, 2, 2, 2)
DILATIONS = (1, 1, 1, 1)
INIT_DIM = 32
BN_EPS = 1e-5

COMPUTE_DTYPE = jnp.bfloat16   # MXU operands / inter-layer activations
TINY_M = 256                   # below this row count, plain XLA wins (feedback #7)

# Flipped by the eager self-tests in __main__ if a Pallas path fails to lower
# on the local chip (robust fallback to plain XLA, forward stays correct).
_USE_FUSED_CONV = True
_USE_PALLAS_GEMM = True


def _round_up(x, m):
    return ((x + m - 1) // m) * m


def _cdiv(a, b):
    return (a + b - 1) // b


def _chip_config():
    """Generation-aware tiling policy (feedback #4/#5)."""
    try:
        kind = jax.devices()[0].device_kind.lower()
    except Exception:
        kind = ""
    if "v7" in kind:
        # v7x: 2 TensorCores / chip, 64 MiB VMEM per core.
        return dict(dual_tc=True, tile_budget=12 * 1024 * 1024,
                    vmem_limit=32 * 1024 * 1024)
    if "v5" in kind or "v6" in kind:
        # v5e / v6e: single TensorCore, 128 MiB VMEM -> take the largest tile.
        return dict(dual_tc=False, tile_budget=24 * 1024 * 1024,
                    vmem_limit=64 * 1024 * 1024)
    return dict(dual_tc=False, tile_budget=8 * 1024 * 1024,
                vmem_limit=32 * 1024 * 1024)


CHIP = _chip_config()


# ---------------------------------------------------------------------------
# GEMM kernels: fused BN scale + bias (+res) (+ReLU) epilogue.
#   * single-K-block variant: no accumulator scratch at all (feedback #2)
#   * multi-K variant: K is an "arbitrary" reduction grid axis with a VMEM
#     f32 accumulator (init/finalize via pl.when)
# ---------------------------------------------------------------------------
def _gemm_k1_kernel(a_ref, w_ref, s_ref, b_ref, o_ref, *, relu):
    y = jnp.dot(a_ref[...], w_ref[...], preferred_element_type=jnp.float32)
    y = y * s_ref[...] + b_ref[...]
    if relu:
        y = jnp.maximum(y, 0.0)
    o_ref[...] = y.astype(o_ref.dtype)


def _gemm_k1_res_kernel(a_ref, w_ref, s_ref, b_ref, r_ref, o_ref, *, relu):
    y = jnp.dot(a_ref[...], w_ref[...], preferred_element_type=jnp.float32)
    y = y * s_ref[...] + b_ref[...] + r_ref[...].astype(jnp.float32)
    if relu:
        y = jnp.maximum(y, 0.0)
    o_ref[...] = y.astype(o_ref.dtype)


def _gemm_acc_kernel(a_ref, w_ref, s_ref, b_ref, o_ref, acc_ref, *, relu):
    k = pl.program_id(1)

    @pl.when(k == 0)
    def _():
        acc_ref[...] = jnp.zeros_like(acc_ref)

    acc_ref[...] += jnp.dot(a_ref[...], w_ref[...],
                            preferred_element_type=jnp.float32)

    @pl.when(k == pl.num_programs(1) - 1)
    def _():
        y = acc_ref[...] * s_ref[...] + b_ref[...]
        if relu:
            y = jnp.maximum(y, 0.0)
        o_ref[...] = y.astype(o_ref.dtype)


def _gemm_acc_res_kernel(a_ref, w_ref, s_ref, b_ref, r_ref, o_ref, acc_ref,
                         *, relu):
    k = pl.program_id(1)

    @pl.when(k == 0)
    def _():
        acc_ref[...] = jnp.zeros_like(acc_ref)

    acc_ref[...] += jnp.dot(a_ref[...], w_ref[...],
                            preferred_element_type=jnp.float32)

    @pl.when(k == pl.num_programs(1) - 1)
    def _():
        y = acc_ref[...] * s_ref[...] + b_ref[...] + r_ref[...].astype(jnp.float32)
        if relu:
            y = jnp.maximum(y, 0.0)
        o_ref[...] = y.astype(o_ref.dtype)


# ---------------------------------------------------------------------------
# GEMM tiling helpers (generation-aware, budget-safe)
# ---------------------------------------------------------------------------
def _pick_tk(K, max_tk=2048):
    if K <= max_tk:
        return K
    t = max_tk - max_tk % 128
    while t >= 128:
        if K % t == 0:
            return t
        t -= 128
    t = max_tk - max_tk % 8
    while t >= 8:
        if K % t == 0:
            return t
        t -= 8
    return None  # no clean divisor -> caller falls back to XLA (budget-safe)


def _gemm_vmem_estimate(tm, tk, tn, has_res, multi_k):
    e = 2 * (tm * tk + tk * tn) * 2     # A, W tiles (bf16, double-buffered)
    e += 2 * tm * tn * 2                # output tile (bf16, double-buffered)
    e += 4 * tn * 4 * 2                 # scale + bias
    if multi_k:
        e += tm * tn * 4                # f32 accumulator scratch
    if has_res:
        e += 2 * tm * tn * 2
    return e


def _pick_tm(m, tk, tn, has_res, multi_k):
    budget = CHIP["tile_budget"]
    cands = (4096, 2048, 1024, 512, 256, 128, 64, 32, 16, 8)
    fits = [t for t in cands if t <= m and m % t == 0
            and _gemm_vmem_estimate(t, tk, tn, has_res, multi_k) <= budget]
    if not fits:
        return None
    if CHIP["dual_tc"]:
        # v7x: make sure the "parallel" M axis has >=2 blocks for 2 TCs.
        for t in fits:
            if m // t >= 2:
                return t
    return fits[0]


# ---------------------------------------------------------------------------
# Fused GEMM wrapper:  y = act(a @ w * scale + bias [+ res])
# ---------------------------------------------------------------------------
def gemm_bn_act(a, w, scale, bias, res=None, relu=True):
    M, K = a.shape
    N = w.shape[1]

    def xla_path():
        y = jnp.dot(a, w, preferred_element_type=jnp.float32) * scale + bias
        if res is not None:
            y = y + res.astype(jnp.float32)
        if relu:
            y = jnp.maximum(y, 0.0)
        return y.astype(COMPUTE_DTYPE)

    if (not _USE_PALLAS_GEMM) or M < TINY_M:
        return xla_path()

    m_pad = _round_up(M, 8)
    a_p, res_p = a, res
    if m_pad != M:
        a_p = jnp.pad(a, ((0, m_pad - M), (0, 0)))
        if res is not None:
            res_p = jnp.pad(res, ((0, m_pad - M), (0, 0)))

    tn = N
    tk = _pick_tk(K)
    if tk is None or K % tk != 0:
        return xla_path()
    kt = K // tk
    tm = _pick_tm(m_pad, tk, tn, res is not None, kt > 1)
    if tm is None:
        return xla_path()

    if kt == 1:
        grid = (m_pad // tm,)
        in_specs = [pl.BlockSpec((tm, K), lambda i: (i, 0)),
                    pl.BlockSpec((K, tn), lambda i: (0, 0)),
                    pl.BlockSpec((1, tn), lambda i: (0, 0)),
                    pl.BlockSpec((1, tn), lambda i: (0, 0))]
        args = [a_p, w, scale, bias]
        scratch = []
        if res is not None:
            in_specs.append(pl.BlockSpec((tm, tn), lambda i: (i, 0)))
            args.append(res_p)
            kern = functools.partial(_gemm_k1_res_kernel, relu=relu)
        else:
            kern = functools.partial(_gemm_k1_kernel, relu=relu)
        out_spec = pl.BlockSpec((tm, tn), lambda i: (i, 0))
        dims = ("parallel",)
    else:
        grid = (m_pad // tm, kt)
        in_specs = [pl.BlockSpec((tm, tk), lambda i, k: (i, k)),
                    pl.BlockSpec((tk, tn), lambda i, k: (k, 0)),
                    pl.BlockSpec((1, tn), lambda i, k: (0, 0)),
                    pl.BlockSpec((1, tn), lambda i, k: (0, 0))]
        args = [a_p, w, scale, bias]
        scratch = [pltpu.VMEM((tm, tn), jnp.float32)]
        if res is not None:
            in_specs.append(pl.BlockSpec((tm, tn), lambda i, k: (i, 0)))
            args.append(res_p)
            kern = functools.partial(_gemm_acc_res_kernel, relu=relu)
        else:
            kern = functools.partial(_gemm_acc_kernel, relu=relu)
        out_spec = pl.BlockSpec((tm, tn), lambda i, k: (i, 0))
        dims = ("parallel", "arbitrary")

    out = pl.pallas_call(
        kern,
        out_shape=jax.ShapeDtypeStruct((m_pad, N), COMPUTE_DTYPE),
        grid_spec=pltpu.PrefetchScalarGridSpec(
            num_scalar_prefetch=0,
            grid=grid,
            in_specs=in_specs,
            out_specs=out_spec,
            scratch_shapes=scratch),
        compiler_params=pltpu.CompilerParams(
            dimension_semantics=dims,
            vmem_limit_bytes=CHIP["vmem_limit"]),
    )(*args)
    return out if m_pad == M else out[:M]


# ---------------------------------------------------------------------------
# Fused stride-1 conv ("flat-shift" trick, feedback #1).
#
# The zero-padded activation is flattened per batch element over (d, h, w) of
# the PADDED grid.  For tap (kd,kh,kw) the needed rows are simply the rows at
# flat offset delta = (kd*Hp + kh)*Wp + kw -- a contiguous window.  The kernel
# DMAs one contiguous (tm + delta_max, C) window per output tile and reduces
# all taps inside the kernel.  Rows that fall in the halo compute garbage and
# are sliced away afterwards (they never feed back into valid outputs).
# ---------------------------------------------------------------------------
def _fused_conv_kernel(x_hbm, w_ref, s_ref, b_ref, o_ref, abuf, *, deltas, relu):
    n = pl.program_id(0)
    i = pl.program_id(1)
    tm, cout = o_ref.shape
    win = abuf.shape[0]
    pltpu.sync_copy(x_hbm.at[n, pl.ds(i * tm, win)], abuf)
    acc = jnp.zeros((tm, cout), jnp.float32)
    for t, d in enumerate(deltas):
        acc = acc + jnp.dot(abuf[d:d + tm, :], w_ref[t],
                            preferred_element_type=jnp.float32)
    y = acc * s_ref[...] + b_ref[...]
    if relu:
        y = jnp.maximum(y, 0.0)
    o_ref[...] = y.astype(o_ref.dtype)


def _fused_conv_res_kernel(x_hbm, w_ref, s_ref, b_ref, r_ref, o_ref, abuf,
                           *, deltas, relu):
    n = pl.program_id(0)
    i = pl.program_id(1)
    tm, cout = o_ref.shape
    win = abuf.shape[0]
    pltpu.sync_copy(x_hbm.at[n, pl.ds(i * tm, win)], abuf)
    acc = jnp.zeros((tm, cout), jnp.float32)
    for t, d in enumerate(deltas):
        acc = acc + jnp.dot(abuf[d:d + tm, :], w_ref[t],
                            preferred_element_type=jnp.float32)
    y = acc * s_ref[...] + b_ref[...] + r_ref[...].astype(jnp.float32)
    if relu:
        y = jnp.maximum(y, 0.0)
    o_ref[...] = y.astype(o_ref.dtype)


def _pick_fused_tm(R, n_batch, C, Cout, dpad, has_res, T):
    budget = CHIP["tile_budget"]

    def est(tm):
        e = (tm + dpad) * C * 2           # A window scratch (bf16)
        e += 2 * T * C * Cout * 2         # tap weights (double-buffered, conservative)
        e += 2 * tm * Cout * 2            # output tile (bf16, double-buffered)
        e += tm * Cout * 4                # f32 accumulator (spilled value)
        if has_res:
            e += 2 * tm * Cout * 2
        return e

    r8 = _round_up(R, 8)
    # One row block per batch element when it fits (fewest grid steps).  On a
    # dual-TensorCore chip (v7x) keep >=2 total grid blocks (feedback #3/#4).
    if r8 <= 2048 and est(r8) <= budget and (not CHIP["dual_tc"] or n_batch >= 2):
        return r8
    for tm in (2048, 1024, 512, 256, 128, 64, 32, 16, 8):
        if tm > r8 or est(tm) > budget:
            continue
        if CHIP["dual_tc"] and n_batch * _cdiv(R, tm) < 2:
            continue
        return tm
    return 8


def fused_conv_s1(x, p, ksize, relu=True, res=None):
    """Fused stride-1 SAME conv + BN + (res) + ReLU; x: (N, D, H, W, C) bf16."""
    Nb, D, H, W, C = x.shape
    T, _, Cout = p["w"].shape
    pad = ksize // 2
    Dp, Hp, Wp = D + 2 * pad, H + 2 * pad, W + 2 * pad

    deltas = tuple((kd * Hp + kh) * Wp + kw
                   for kd in range(ksize)
                   for kh in range(ksize)
                   for kw in range(ksize))
    dmax = deltas[-1]
    dpad = _round_up(dmax, 8)
    R = D * Hp * Wp                      # rows computed per batch (incl. halo)

    tm = _pick_fused_tm(R, Nb, C, Cout, dpad, res is not None, T)
    R_pad = _round_up(R, tm)
    win = tm + dpad
    L = R_pad + dpad                     # flat row length per batch (in-bounds for all taps)

    xp = jnp.pad(x, ((0, 0), (pad, pad), (pad, pad), (pad, pad), (0, 0)))
    x_flat = xp.reshape(Nb, Dp * Hp * Wp, C)
    x_flat = jnp.pad(x_flat, ((0, 0), (0, L - Dp * Hp * Wp), (0, 0)))

    args = [x_flat, p["w"], p["scale"], p["bias"]]
    in_specs = [
        pl.BlockSpec(memory_space=pl.ANY),                       # stays in HBM
        pl.BlockSpec((T, C, Cout), lambda n, i: (0, 0, 0)),       # tap weights
        pl.BlockSpec((1, Cout), lambda n, i: (0, 0)),             # BN scale
        pl.BlockSpec((1, Cout), lambda n, i: (0, 0)),             # BN bias
    ]
    if res is not None:
        # Embed the residual into the halo-row layout so it fuses cleanly.
        res_h = jnp.pad(res, ((0, 0), (0, 0), (0, 2 * pad), (0, 2 * pad), (0, 0)))
        res_flat = res_h.reshape(Nb, R, Cout)
        res_flat = jnp.pad(res_flat, ((0, 0), (0, R_pad - R), (0, 0)))
        args.append(res_flat)
        in_specs.append(pl.BlockSpec((None, tm, Cout), lambda n, i: (n, i, 0)))
        kern = functools.partial(_fused_conv_res_kernel, deltas=deltas, relu=relu)
    else:
        kern = functools.partial(_fused_conv_kernel, deltas=deltas, relu=relu)

    out = pl.pallas_call(
        kern,
        out_shape=jax.ShapeDtypeStruct((Nb, R_pad, Cout), COMPUTE_DTYPE),
        grid_spec=pltpu.PrefetchScalarGridSpec(
            num_scalar_prefetch=0,
            grid=(Nb, R_pad // tm),
            in_specs=in_specs,
            out_specs=pl.BlockSpec((None, tm, Cout), lambda n, i: (n, i, 0)),
            scratch_shapes=[pltpu.VMEM((win, C), COMPUTE_DTYPE)]),
        compiler_params=pltpu.CompilerParams(
            dimension_semantics=("parallel", "parallel"),
            vmem_limit_bytes=CHIP["vmem_limit"]),
    )(*args)

    out = out[:, :R, :].reshape(Nb, D, Hp, Wp, Cout)[:, :, :H, :W, :]
    return out


# ---------------------------------------------------------------------------
# im2col helpers (only used where they do NOT amplify HBM traffic, or on the
# tiny XLA fallback path)
# ---------------------------------------------------------------------------
def _im2col_stack(x, ksize, stride, dilation=1, extra_taps=0):
    N, D, H, W, C = x.shape
    if stride == 1:
        pad = dilation * (ksize // 2)
        Do, Ho, Wo = D, H, W
    else:
        pad = 0
        Do, Ho, Wo = D // stride, H // stride, W // stride
    xp = jnp.pad(x, ((0, 0), (pad, pad), (pad, pad), (pad, pad), (0, 0)))
    cols = []
    for kd in range(ksize):
        for kh in range(ksize):
            for kw in range(ksize):
                d0, h0, w0 = kd * dilation, kh * dilation, kw * dilation
                cols.append(xp[:, d0:d0 + stride * Do:stride,
                               h0:h0 + stride * Ho:stride,
                               w0:w0 + stride * Wo:stride, :])
    for _ in range(extra_taps):
        cols.append(jnp.zeros_like(cols[0]))
    patches = jnp.stack(cols, axis=-2)
    return (patches.reshape(N * Do * Ho * Wo, (ksize ** 3 + extra_taps) * C),
            (N, Do, Ho, Wo))


def _im2col_k2s2(x):
    # kernel=2, stride=2: pure reshape/transpose, no data duplication.
    N, D, H, W, C = x.shape
    Do, Ho, Wo = D // 2, H // 2, W // 2
    xr = x.reshape(N, Do, 2, Ho, 2, Wo, 2, C)
    xr = jnp.transpose(xr, (0, 1, 3, 5, 2, 4, 6, 7))
    return xr.reshape(N * Do * Ho * Wo, 8 * C), (N, Do, Ho, Wo)


def _conv_xla(x, p, ksize, stride, dilation, relu, res):
    """Plain-XLA fallback for tiny layers and unsupported configurations."""
    T, C, Cout = p["w"].shape
    a, (n, do, ho, wo) = _im2col_stack(x, ksize, stride, dilation)
    y = jnp.dot(a, p["w"].reshape(T * C, Cout),
                preferred_element_type=jnp.float32)
    y = y * p["scale"] + p["bias"]
    if res is not None:
        y = y + res.reshape(-1, Cout).astype(jnp.float32)
    if relu:
        y = jnp.maximum(y, 0.0)
    return y.astype(COMPUTE_DTYPE).reshape(n, do, ho, wo, Cout)


# ---------------------------------------------------------------------------
# Conv + BN + act dispatcher
# ---------------------------------------------------------------------------
def conv_bn_act(x, p, ksize, stride, dilation=1, relu=True, res=None):
    Nb, D, H, W, C = x.shape
    T, _, Cout = p["w"].shape
    if stride == 1:
        Do, Ho, Wo = D, H, W
    else:
        Do, Ho, Wo = D // stride, H // stride, W // stride
    m_valid = Nb * Do * Ho * Wo

    # Tiny late-stage layers: XLA (Pallas launch/pipeline overhead dominates).
    if m_valid < TINY_M:
        return _conv_xla(x, p, ksize, stride, dilation, relu, res)

    if ksize == 1 and stride == 1:
        y = gemm_bn_act(x.reshape(m_valid, C), p["w"].reshape(C, Cout),
                        p["scale"], p["bias"],
                        res=None if res is None else res.reshape(m_valid, Cout),
                        relu=relu)
        return y.reshape(Nb, Do, Ho, Wo, Cout)

    if (_USE_FUSED_CONV and stride == 1 and dilation == 1
            and T <= 32 and C >= 16):
        # Fused tap reduction inside the kernel; no im2col matrix in HBM.
        return fused_conv_s1(x, p, ksize, relu=relu, res=res)

    if stride == 2 and ksize == 2:
        a, _ = _im2col_k2s2(x)
        w_flat = p["w"].reshape(T * C, Cout)
    else:
        # conv0 (5^3, C_in=3): per-tap fused dots would have K=3, so keep the
        # im2col + GEMM path, padding K to a multiple of 128 with zero taps.
        extra = 0
        for e in range(17):
            if (T + e) * C % 128 == 0:
                extra = e
                break
        a, _ = _im2col_stack(x, ksize, stride, dilation, extra_taps=extra)
        w_flat = p["w"].reshape(T * C, Cout)
        if extra:
            w_flat = jnp.pad(w_flat, ((0, extra * C), (0, 0)))

    y = gemm_bn_act(a, w_flat, p["scale"], p["bias"],
                    res=None if res is None else res.reshape(m_valid, Cout),
                    relu=relu)
    return y.reshape(Nb, Do, Ho, Wo, Cout)


# ---------------------------------------------------------------------------
# Parameter init (deterministic, synthetic).  BN eval mode -> f32 scale/bias.
# ---------------------------------------------------------------------------
def init_conv_bn(key, ksize, cin, cout):
    taps = ksize ** 3
    fan_in = taps * cin
    w = jax.random.normal(key, (taps, cin, cout), jnp.float32) * jnp.sqrt(2.0 / fan_in)
    gamma = jnp.ones((1, cout), jnp.float32)
    beta = jnp.zeros((1, cout), jnp.float32)
    running_mean = jnp.zeros((1, cout), jnp.float32)
    running_var = jnp.ones((1, cout), jnp.float32)
    scale = gamma / jnp.sqrt(running_var + BN_EPS)
    bias = beta - running_mean * scale
    # Weights stored bf16 (MXU operands); BN scale/bias stay in the f32 epilogue.
    return {"w": w.astype(COMPUTE_DTYPE), "scale": scale, "bias": bias}


def init_basic_block(key, cin, planes):
    k1, k2, k3 = jax.random.split(key, 3)
    p = {"conv1": init_conv_bn(k1, 3, cin, planes),
         "conv2": init_conv_bn(k2, 3, planes, planes)}
    if cin != planes:   # downsample: 1x1 conv + BN
        p["down"] = init_conv_bn(k3, 1, cin, planes)
    return p


def init_encoder(key, in_channels):
    keys = iter(jax.random.split(key, 64))
    P = {}
    inplanes = INIT_DIM
    P["conv0"] = init_conv_bn(next(keys), 5, in_channels, inplanes)
    for s in range(4):
        P[f"conv{s + 1}"] = init_conv_bn(next(keys), 2, inplanes, inplanes)
        blocks = []
        for _ in range(LAYERS[s]):
            blocks.append(init_basic_block(next(keys), inplanes, PLANES[s]))
            inplanes = PLANES[s]
        P[f"block{s + 1}"] = blocks
    return P


def basic_block(x, p, dilation=1):
    out = conv_bn_act(x, p["conv1"], 3, 1, dilation, relu=True)
    if "down" in p:
        res = conv_bn_act(x, p["down"], 1, 1, 1, relu=False)
    else:
        res = x
    out = conv_bn_act(out, p["conv2"], 3, 1, dilation, relu=True, res=res)
    return out


# ---------------------------------------------------------------------------
# Forward pass (mirrors EncoderBase.forward)
# ---------------------------------------------------------------------------
def encoder_forward(x_ncdhw, P):
    # PyTorch-style NCDHW input -> NDHWC bf16 for the kernel path.
    x = jnp.transpose(x_ncdhw, (0, 2, 3, 4, 1)).astype(COMPUTE_DTYPE)

    out_p1 = conv_bn_act(x, P["conv0"], 5, 1, 1, relu=True)      # conv0p1s1+bn0+act
    outs = {"input": out_p1}
    cur = out_p1
    names = ("b1", "b2", "b3", "b4")
    for s in range(4):
        cur = conv_bn_act(cur, P[f"conv{s + 1}"], 2, 2, 1, relu=True)
        for bp in P[f"block{s + 1}"]:
            cur = basic_block(cur, bp, DILATIONS[s])
        outs[names[s]] = cur
    return outs


if __name__ == "__main__":
    in_channels = 3
    batch, spatial = 2, 16
    key = jax.random.PRNGKey(0)
    kx, kp, kc = jax.random.split(key, 3)

    # ---- eager self-tests of the Pallas paths (fall back to XLA if needed) ----
    kc1, kc2, kc3 = jax.random.split(kc, 3)
    xc = jax.random.normal(kc1, (2, 8, 8, 8, 32), jnp.float32).astype(COMPUTE_DTYPE)
    rc = jax.random.normal(kc2, (2, 8, 8, 8, 32), jnp.float32).astype(COMPUTE_DTYPE)
    pc = init_conv_bn(kc3, 3, 32, 32)
    try:
        y_f = fused_conv_s1(xc, pc, 3, relu=True)
        y_fr = fused_conv_s1(xc, pc, 3, relu=True, res=rc)
        jax.block_until_ready((y_f, y_fr))
    except Exception:
        _USE_FUSED_CONV = False
    if _USE_FUSED_CONV:
        y_ref = _conv_xla(xc, pc, 3, 1, 1, True, None).astype(jnp.float32)
        y_ref_r = _conv_xla(xc, pc, 3, 1, 1, True, rc).astype(jnp.float32)
        e1 = float(jnp.max(jnp.abs(y_f.astype(jnp.float32) - y_ref)))
        e2 = float(jnp.max(jnp.abs(y_fr.astype(jnp.float32) - y_ref_r)))
        assert e1 < 0.15 and e2 < 0.15, (e1, e2)

    ka, kw_ = jax.random.split(kc1)
    ag = jax.random.normal(ka, (512, 256), jnp.float32).astype(COMPUTE_DTYPE)
    wg = (jax.random.normal(kw_, (256, 64), jnp.float32) * 0.05).astype(COMPUTE_DTYPE)
    sg = jnp.ones((1, 64), jnp.float32)
    bg = jnp.zeros((1, 64), jnp.float32)
    try:
        yg = gemm_bn_act(ag, wg, sg, bg, relu=True)
        jax.block_until_ready(yg)
    except Exception:
        _USE_PALLAS_GEMM = False
    if _USE_PALLAS_GEMM:
        yg_ref = jnp.maximum(jnp.dot(ag, wg, preferred_element_type=jnp.float32), 0.0)
        eg = float(jnp.max(jnp.abs(yg.astype(jnp.float32) - yg_ref)))
        assert eg < 0.15, eg

    # ---- full encoder forward ----
    x = jax.random.normal(kx, (batch, in_channels, spatial, spatial, spatial),
                          jnp.float32)
    params = init_encoder(kp, in_channels)

    fwd = jax.jit(encoder_forward)
    outs = fwd(x, params)
    outs = jax.tree_util.tree_map(jax.block_until_ready, outs)

    # sanity: shapes match EncoderBase contract (channels / strides), NDHWC
    assert outs["input"].shape == (batch, 16, 16, 16, 32)
    assert outs["b1"].shape == (batch, 8, 8, 8, 32)
    assert outs["b2"].shape == (batch, 4, 4, 4, 64)
    assert outs["b3"].shape == (batch, 2, 2, 2, 128)
    assert outs["b4"].shape == (batch, 1, 1, 1, 256)
    print("KERNEL_OK")
</pallas_src>

<mosaic_0001>
module attributes {stable_mosaic.version = 11 : i64} {
  func.func @_fused_conv_kernel(%arg0: i32, %arg1: i32, %arg2: memref<2x1024x32xbf16, #tpu.memory_space<any>>, %arg3: memref<27x32x32xbf16, #tpu.memory_space<vmem>>, %arg4: memref<1x32xf32, #tpu.memory_space<vmem>>, %arg5: memref<1x32xf32, #tpu.memory_space<vmem>>, %arg6: memref<1x800x32xbf16, #tpu.memory_space<vmem>>, %arg7: memref<1024x32xbf16, #tpu.memory_space<vmem>>) attributes {dimension_semantics = [#tpu.dimension_semantics<parallel>, #tpu.dimension_semantics<parallel>], iteration_bounds = array<i64: 2, 1>, scalar_prefetch = 0 : i64, scratch_operands = 1 : i64, tpu.core_type = #tpu.core_type<tc>, window_params = [{}, {pipeline_mode = #tpu.pipeline_mode<synchronous>, transform_indices = @transform_1, window_bounds = array<i64: 27, 32, 32>}, {pipeline_mode = #tpu.pipeline_mode<synchronous>, transform_indices = @transform_2, window_bounds = array<i64: 1, 32>}, {pipeline_mode = #tpu.pipeline_mode<synchronous>, transform_indices = @transform_3, window_bounds = array<i64: 1, 32>}, {transform_indices = @transform_4, window_bounds = array<i64: 1, 800, 32>}]} {
    %c800_i32 = arith.constant 800 : i32
    %0 = arith.muli %arg1, %c800_i32 : i32
    "tpu.region"() ({
      %149 = tpu.sem_alloc : memref<!tpu.dma_semaphore, #tpu.memory_space<semaphore_mem>>
      %c0_i32 = arith.constant 0 : i32
      %150 = tpu.memref_slice %arg2[%arg0, %0, %c0_i32] : memref<2x1024x32xbf16, #tpu.memory_space<any>> -> memref<1x1024x32xbf16, #tpu.memory_space<any>>
      %151 = tpu.memref_squeeze %150 : memref<1x1024x32xbf16, #tpu.memory_space<any>> -> memref<1024x32xbf16, #tpu.memory_space<any>>
      tpu.enqueue_dma source(%151 : memref<1024x32xbf16, #tpu.memory_space<any>>) target(%arg7 : memref<1024x32xbf16, #tpu.memory_space<vmem>>) target_semaphore(%149 : memref<!tpu.dma_semaphore, #tpu.memory_space<semaphore_mem>>)
      %c0_i32_125 = arith.constant 0 : i32
      %152 = tpu.memref_slice %arg2[%arg0, %0, %c0_i32_125] : memref<2x1024x32xbf16, #tpu.memory_space<any>> -> memref<1x1024x32xbf16, #tpu.memory_space<any>>
      %153 = tpu.memref_squeeze %152 : memref<1x1024x32xbf16, #tpu.memory_space<any>> -> memref<1024x32xbf16, #tpu.memory_space<any>>
      tpu.wait_dma2 semaphore(%149 : memref<!tpu.dma_semaphore, #tpu.memory_space<semaphore_mem>>) src(%153 : memref<1024x32xbf16, #tpu.memory_space<any>>) dst(%arg7 : memref<1024x32xbf16, #tpu.memory_space<vmem>>)
      tpu.yield
    }) : () -> ()
    %cst = arith.constant 0.000000e+00 : f32
    %1 = vector.broadcast %cst : f32 to vector<800x32xf32>
    %c0 = arith.constant 0 : index
    %c0_0 = arith.constant 0 : index
    %2 = vector.load %arg7[%c0, %c0_0] : memref<1024x32xbf16, #tpu.memory_space<vmem>>, vector<800x32xbf16>
    %c0_1 = arith.constant 0 : index
    %c0_2 = arith.constant 0 : index
    %c0_3 = arith.constant 0 : index
    %3 = vector.load %arg3[%c0_1, %c0_2, %c0_3] : memref<27x32x32xbf16, #tpu.memory_space<vmem>>, vector<1x32x32xbf16>
    %4 = vector.shape_cast %3 : vector<1x32x32xbf16> to vector<32x32xbf16>
    %cst_4 = arith.constant dense<0.000000e+00> : vector<800x32xf32>
    %5 = tpu.matmul %2, %4, %cst_4 {dimension_numbers = #tpu.dot_dimension_numbers<[1], [0], [0], [1], [0, 0, 1, 1], [], []>} : vector<800x32xbf16>, vector<32x32xbf16>, vector<800x32xf32> -> vector<800x32xf32>
    %6 = arith.addf %1, %5 : vector<800x32xf32>
    %c1 = arith.constant 1 : index
    %c0_5 = arith.constant 0 : index
    %7 = vector.load %arg7[%c1, %c0_5] : memref<1024x32xbf16, #tpu.memory_space<vmem>>, vector<800x32xbf16>
    %c1_6 = arith.constant 1 : index
    %c0_7 = arith.constant 0 : index
    %c0_8 = arith.constant 0 : index
    %8 = vector.load %arg3[%c1_6, %c0_7, %c0_8] : memref<27x32x32xbf16, #tpu.memory_space<vmem>>, vector<1x32x32xbf16>
    %9 = vector.shape_cast %8 : vector<1x32x32xbf16> to vector<32x32xbf16>
    %cst_9 = arith.constant dense<0.000000e+00> : vector<800x32xf32>
    %10 = tpu.matmul %7, %9, %cst_9 {dimension_numbers = #tpu.dot_dimension_numbers<[1], [0], [0], [1], [0, 0, 1, 1], [], []>} : vector<800x32xbf16>, vector<32x32xbf16>, vector<800x32xf32> -> vector<800x32xf32>
    %11 = arith.addf %6, %10 : vector<800x32xf32>
    %c2 = arith.constant 2 : index
    %c0_10 = arith.constant 0 : index
    %12 = vector.load %arg7[%c2, %c0_10] : memref<1024x32xbf16, #tpu.memory_space<vmem>>, vector<800x32xbf16>
    %c2_11 = arith.constant 2 : index
    %c0_12 = arith.constant 0 : index
    %c0_13 = arith.constant 0 : index
    %13 = vector.load %arg3[%c2_11, %c0_12, %c0_13] : memref<27x32x32xbf16, #tpu.memory_space<vmem>>, vector<1x32x32xbf16>
    %14 = vector.shape_cast %13 : vector<1x32x32xbf16> to vector<32x32xbf16>
    %cst_14 = arith.constant dense<0.000000e+00> : vector<800x32xf32>
    %15 = tpu.matmul %12, %14, %cst_14 {dimension_numbers = #tpu.dot_dimension_numbers<[1], [0], [0], [1], [0, 0, 1, 1], [], []>} : vector<800x32xbf16>, vector<32x32xbf16>, vector<800x32xf32> -> vector<800x32xf32>
    %16 = arith.addf %11, %15 : vector<800x32xf32>
    %c10 = arith.constant 10 : index
    %c0_15 = arith.constant 0 : index
    %17 = vector.load %arg7[%c10, %c0_15] : memref<1024x32xbf16, #tpu.memory_space<vmem>>, vector<800x32xbf16>
    %c3 = arith.constant 3 : index
    %c0_16 = arith.constant 0 : index
    %c0_17 = arith.constant 0 : index
    %18 = vector.load %arg3[%c3, %c0_16, %c0_17] : memref<27x32x32xbf16, #tpu.memory_space<vmem>>, vector<1x32x32xbf16>
    %19 = vector.shape_cast %18 : vector<1x32x32xbf16> to vector<32x32xbf16>
    %cst_18 = arith.constant dense<0.000000e+00> : vector<800x32xf32>
    %20 = tpu.matmul %17, %19, %cst_18 {dimension_numbers = #tpu.dot_dimension_numbers<[1], [0], [0], [1], [0, 0, 1, 1], [], []>} : vector<800x32xbf16>, vector<32x32xbf16>, vector<800x32xf32> -> vector<800x32xf32>
    %21 = arith.addf %16, %20 : vector<800x32xf32>
    %c11 = arith.constant 11 : index
    %c0_19 = arith.constant 0 : index
    %22 = vector.load %arg7[%c11, %c0_19] : memref<1024x32xbf16, #tpu.memory_space<vmem>>, vector<800x32xbf16>
    %c4 = arith.constant 4 : index
    %c0_20 = arith.constant 0 : index
    %c0_21 = arith.constant 0 : index
    %23 = vector.load %arg3[%c4, %c0_20, %c0_21] : memref<27x32x32xbf16, #tpu.memory_space<vmem>>, vector<1x32x32xbf16>
    %24 = vector.shape_cast %23 : vector<1x32x32xbf16> to vector<32x32xbf16>
    %cst_22 = arith.constant dense<0.000000e+00> : vector<800x32xf32>
    %25 = tpu.matmul %22, %24, %cst_22 {dimension_numbers = #tpu.dot_dimension_numbers<[1], [0], [0], [1], [0, 0, 1, 1], [], []>} : vector<800x32xbf16>, vector<32x32xbf16>, vector<800x32xf32> -> vector<800x32xf32>
    %26 = arith.addf %21, %25 : vector<800x32xf32>
    %c12 = arith.constant 12 : index
    %c0_23 = arith.constant 0 : index
    %27 = vector.load %arg7[%c12, %c0_23] : memref<1024x32xbf16, #tpu.memory_space<vmem>>, vector<800x32xbf16>
    %c5 = arith.constant 5 : index
    %c0_24 = arith.constant 0 : index
    %c0_25 = arith.constant 0 : index
    %28 = vector.load %arg3[%c5, %c0_24, %c0_25] : memref<27x32x32xbf16, #tpu.memory_space<vmem>>, vector<1x32x32xbf16>
    %29 = vector.shape_cast %28 : vector<1x32x32xbf16> to vector<32x32xbf16>
    %cst_26 = arith.constant dense<0.000000e+00> : vector<800x32xf32>
    %30 = tpu.matmul %27, %29, %cst_26 {dimension_numbers = #tpu.dot_dimension_numbers<[1], [0], [0], [1], [0, 0, 1, 1], [], []>} : vector<800x32xbf16>, vector<32x32xbf16>, vector<800x32xf32> -> vector<800x32xf32>
    %31 = arith.addf %26, %30 : vector<800x32xf32>
    %c20 = arith.constant 20 : index
    %c0_27 = arith.constant 0 : index
    %32 = vector.load %arg7[%c20, %c0_27] : memref<1024x32xbf16, #tpu.memory_space<vmem>>, vector<800x32xbf16>
    %c6 = arith.constant 6 : index
    %c0_28 = arith.constant 0 : index
    %c0_29 = arith.constant 0 : index
    %33 = vector.load %arg3[%c6, %c0_28, %c0_29] : memref<27x32x32xbf16, #tpu.memory_space<vmem>>, vector<1x32x32xbf16>
    %34 = vector.shape_cast %33 : vector<1x32x32xbf16> to vector<32x32xbf16>
    %cst_30 = arith.constant dense<0.000000e+00> : vector<800x32xf32>
    %35 = tpu.matmul %32, %34, %cst_30 {dimension_numbers = #tpu.dot_dimension_numbers<[1], [0], [0], [1], [0, 0, 1, 1], [], []>} : vector<800x32xbf16>, vector<32x32xbf16>, vector<800x32xf32> -> vector<800x32xf32>
    %36 = arith.addf %31, %35 : vector<800x32xf32>
    %c21 = arith.constant 21 : index
    %c0_31 = arith.constant 0 : index
    %37 = vector.load %arg7[%c21, %c0_31] : memref<1024x32xbf16, #tpu.memory_space<vmem>>, vector<800x32xbf16>
    %c7 = arith.constant 7 : index
    %c0_32 = arith.constant 0 : index
    %c0_33 = arith.constant 0 : index
    %38 = vector.load %arg3[%c7, %c0_32, %c0_33] : memref<27x32x32xbf16, #tpu.memory_space<vmem>>, vector<1x32x32xbf16>
    %39 = vector.shape_cast %38 : vector<1x32x32xbf16> to vector<32x32xbf16>
    %cst_34 = arith.constant dense<0.000000e+00> : vector<800x32xf32>
    %40 = tpu.matmul %37, %39, %cst_34 {dimension_numbers = #tpu.dot_dimension_numbers<[1], [0], [0], [1], [0, 0, 1, 1], [], []>} : vector<800x32xbf16>, vector<32x32xbf16>, vector<800x32xf32> -> vector<800x32xf32>
    %41 = arith.addf %36, %40 : vector<800x32xf32>
    %c22 = arith.constant 22 : index
    %c0_35 = arith.constant 0 : index
    %42 = vector.load %arg7[%c22, %c0_35] : memref<1024x32xbf16, #tpu.memory_space<vmem>>, vector<800x32xbf16>
    %c8 = arith.constant 8 : index
    %c0_36 = arith.constant 0 : index
    %c0_37 = arith.constant 0 : index
    %43 = vector.load %arg3[%c8, %c0_36, %c0_37] : memref<27x32x32xbf16, #tpu.memory_space<vmem>>, vector<1x32x32xbf16>
    %44 = vector.shape_cast %43 : vector<1x32x32xbf16> to vector<32x32xbf16>
    %cst_38 = arith.constant dense<0.000000e+00> : vector<800x32xf32>
    %45 = tpu.matmul %42, %44, %cst_38 {dimension_numbers = #tpu.dot_dimension_numbers<[1], [0], [0], [1], [0, 0, 1, 1], [], []>} : vector<800x32xbf16>, vector<32x32xbf16>, vector<800x32xf32> -> vector<800x32xf32>
    %46 = arith.addf %41, %45 : vector<800x32xf32>
    %c100 = arith.constant 100 : index
    %c0_39 = arith.constant 0 : index
    %47 = vector.load %arg7[%c100, %c0_39] : memref<1024x32xbf16, #tpu.memory_space<vmem>>, vector<800x32xbf16>
    %c9 = arith.constant 9 : index
    %c0_40 = arith.constant 0 : index
    %c0_41 = arith.constant 0 : index
    %48 = vector.load %arg3[%c9, %c0_40, %c0_41] : memref<27x32x32xbf16, #tpu.memory_space<vmem>>, vector<1x32x32xbf16>
    %49 = vector.shape_cast %48 : vector<1x32x32xbf16> to vector<32x32xbf16>
    %cst_42 = arith.constant dense<0.000000e+00> : vector<800x32xf32>
    %50 = tpu.matmul %47, %49, %cst_42 {dimension_numbers = #tpu.dot_dimension_numbers<[1], [0], [0], [1], [0, 0, 1, 1], [], []>} : vector<800x32xbf16>, vector<32x32xbf16>, vector<800x32xf32> -> vector<800x32xf32>
    %51 = arith.addf %46, %50 : vector<800x32xf32>
    %c101 = arith.constant 101 : index
    %c0_43 = arith.constant 0 : index
    %52 = vector.load %arg7[%c101, %c0_43] : memref<1024x32xbf16, #tpu.memory_space<vmem>>, vector<800x32xbf16>
    %c10_44 = arith.constant 10 : index
    %c0_45 = arith.constant 0 : index
    %c0_46 = arith.constant 0 : index
    %53 = vector.load %arg3[%c10_44, %c0_45, %c0_46] : memref<27x32x32xbf16, #tpu.memory_space<vmem>>, vector<1x32x32xbf16>
    %54 = vector.shape_cast %53 : vector<1x32x32xbf16> to vector<32x32xbf16>
    %cst_47 = arith.constant dense<0.000000e+00> : vector<800x32xf32>
    %55 = tpu.matmul %52, %54, %cst_47 {dimension_numbers = #tpu.dot_dimension_numbers<[1], [0], [0], [1], [0, 0, 1, 1], [], []>} : vector<800x32xbf16>, vector<32x32xbf16>, vector<800x32xf32> -> vector<800x32xf32>
    %56 = arith.addf %51, %55 : vector<800x32xf32>
    %c102 = arith.constant 102 : index
    %c0_48 = arith.constant 0 : index
    %57 = vector.load %arg7[%c102, %c0_48] : memref<1024x32xbf16, #tpu.memory_space<vmem>>, vector<800x32xbf16>
    %c11_49 = arith.constant 11 : index
    %c0_50 = arith.constant 0 : index
    %c0_51 = arith.constant 0 : index
    %58 = vector.load %arg3[%c11_49, %c0_50, %c0_51] : memref<27x32x32xbf16, #tpu.memory_space<vmem>>, vector<1x32x32xbf16>
    %59 = vector.shape_cast %58 : vector<1x32x32xbf16> to vector<32x32xbf16>
    %cst_52 = arith.constant dense<0.000000e+00> : vector<800x32xf32>
    %60 = tpu.matmul %57, %59, %cst_52 {dimension_numbers = #tpu.dot_dimension_numbers<[1], [0], [0], [1], [0, 0, 1, 1], [], []>} : vector<800x32xbf16>, vector<32x32xbf16>, vector<800x32xf32> -> vector<800x32xf32>
    %61 = arith.addf %56, %60 : vector<800x32xf32>
    %c110 = arith.constant 110 : index
    %c0_53 = arith.constant 0 : index
    %62 = vector.load %arg7[%c110, %c0_53] : memref<1024x32xbf16, #tpu.memory_space<vmem>>, vector<800x32xbf16>
    %c12_54 = arith.constant 12 : index
    %c0_55 = arith.constant 0 : index
    %c0_56 = arith.constant 0 : index
    %63 = vector.load %arg3[%c12_54, %c0_55, %c0_56] : memref<27x32x32xbf16, #tpu.memory_space<vmem>>, vector<1x32x32xbf16>
    %64 = vector.shape_cast %63 : vector<1x32x32xbf16> to vector<32x32xbf16>
    %cst_57 = arith.constant dense<0.000000e+00> : vector<800x32xf32>
    %65 = tpu.matmul %62, %64, %cst_57 {dimension_numbers = #tpu.dot_dimension_numbers<[1], [0], [0], [1], [0, 0, 1, 1], [], []>} : vector<800x32xbf16>, vector<32x32xbf16>, vector<800x32xf32> -> vector<800x32xf32>
    %66 = arith.addf %61, %65 : vector<800x32xf32>
    %c111 = arith.constant 111 : index
    %c0_58 = arith.constant 0 : index
    %67 = vector.load %arg7[%c111, %c0_58] : memref<1024x32xbf16, #tpu.memory_space<vmem>>, vector<800x32xbf16>
    %c13 = arith.constant 13 : index
    %c0_59 = arith.constant 0 : index
    %c0_60 = arith.constant 0 : index
    %68 = vector.load %arg3[%c13, %c0_59, %c0_60] : memref<27x32x32xbf16, #tpu.memory_space<vmem>>, vector<1x32x32xbf16>
    %69 = vector.shape_cast %68 : vector<1x32x32xbf16> to vector<32x32xbf16>
    %cst_61 = arith.constant dense<0.000000e+00> : vector<800x32xf32>
    %70 = tpu.matmul %67, %69, %cst_61 {dimension_numbers = #tpu.dot_dimension_numbers<[1], [0], [0], [1], [0, 0, 1, 1], [], []>} : vector<800x32xbf16>, vector<32x32xbf16>, vector<800x32xf32> -> vector<800x32xf32>
    %71 = arith.addf %66, %70 : vector<800x32xf32>
    %c112 = arith.constant 112 : index
    %c0_62 = arith.constant 0 : index
    %72 = vector.load %arg7[%c112, %c0_62] : memref<1024x32xbf16, #tpu.memory_space<vmem>>, vector<800x32xbf16>
    %c14 = arith.constant 14 : index
    %c0_63 = arith.constant 0 : index
    %c0_64 = arith.constant 0 : index
    %73 = vector.load %arg3[%c14, %c0_63, %c0_64] : memref<27x32x32xbf16, #tpu.memory_space<vmem>>, vector<1x32x32xbf16>
    %74 = vector.shape_cast %73 : vector<1x32x32xbf16> to vector<32x32xbf16>
    %cst_65 = arith.constant dense<0.000000e+00> : vector<800x32xf32>
    %75 = tpu.matmul %72, %74, %cst_65 {dimension_numbers = #tpu.dot_dimension_numbers<[1], [0], [0], [1], [0, 0, 1, 1], [], []>} : vector<800x32xbf16>, vector<32x32xbf16>, vector<800x32xf32> -> vector<800x32xf32>
    %76 = arith.addf %71, %75 : vector<800x32xf32>
    %c120 = arith.constant 120 : index
    %c0_66 = arith.constant 0 : index
    %77 = vector.load %arg7[%c120, %c0_66] : memref<1024x32xbf16, #tpu.memory_space<vmem>>, vector<800x32xbf16>
    %c15 = arith.constant 15 : index
    %c0_67 = arith.constant 0 : index
    %c0_68 = arith.constant 0 : index
    %78 = vector.load %arg3[%c15, %c0_67, %c0_68] : memref<27x32x32xbf16, #tpu.memory_space<vmem>>, vector<1x32x32xbf16>
    %79 = vector.shape_cast %78 : vector<1x32x32xbf16> to vector<32x32xbf16>
    %cst_69 = arith.constant dense<0.000000e+00> : vector<800x32xf32>
    %80 = tpu.matmul %77, %79, %cst_69 {dimension_numbers = #tpu.dot_dimension_numbers<[1], [0], [0], [1], [0, 0, 1, 1], [], []>} : vector<800x32xbf16>, vector<32x32xbf16>, vector<800x32xf32> -> vector<800x32xf32>
    %81 = arith.addf %76, %80 : vector<800x32xf32>
    %c121 = arith.constant 121 : index
    %c0_70 = arith.constant 0 : index
    %82 = vector.load %arg7[%c121, %c0_70] : memref<1024x32xbf16, #tpu.memory_space<vmem>>, vector<800x32xbf16>
    %c16 = arith.constant 16 : index
    %c0_71 = arith.constant 0 : index
    %c0_72 = arith.constant 0 : index
    %83 = vector.load %arg3[%c16, %c0_71, %c0_72] : memref<27x32x32xbf16, #tpu.memory_space<vmem>>, vector<1x32x32xbf16>
    %84 = vector.shape_cast %83 : vector<1x32x32xbf16> to vector<32x32xbf16>
    %cst_73 = arith.constant dense<0.000000e+00> : vector<800x32xf32>
    %85 = tpu.matmul %82, %84, %cst_73 {dimension_numbers = #tpu.dot_dimension_numbers<[1], [0], [0], [1], [0, 0, 1, 1], [], []>} : vector<800x32xbf16>, vector<32x32xbf16>, vector<800x32xf32> -> vector<800x32xf32>
    %86 = arith.addf %81, %85 : vector<800x32xf32>
    %c122 = arith.constant 122 : index
    %c0_74 = arith.constant 0 : index
    %87 = vector.load %arg7[%c122, %c0_74] : memref<1024x32xbf16, #tpu.memory_space<vmem>>, vector<800x32xbf16>
    %c17 = arith.constant 17 : index
    %c0_75 = arith.constant 0 : index
    %c0_76 = arith.constant 0 : index
    %88 = vector.load %arg3[%c17, %c0_75, %c0_76] : memref<27x32x32xbf16, #tpu.memory_space<vmem>>, vector<1x32x32xbf16>
    %89 = vector.shape_cast %88 : vector<1x32x32xbf16> to vector<32x32xbf16>
    %cst_77 = arith.constant dense<0.000000e+00> : vector<800x32xf32>
    %90 = tpu.matmul %87, %89, %cst_77 {dimension_numbers = #tpu.dot_dimension_numbers<[1], [0], [0], [1], [0, 0, 1, 1], [], []>} : vector<800x32xbf16>, vector<32x32xbf16>, vector<800x32xf32> -> vector<800x32xf32>
    %91 = arith.addf %86, %90 : vector<800x32xf32>
    %c200 = arith.constant 200 : index
    %c0_78 = arith.constant 0 : index
    %92 = vector.load %arg7[%c200, %c0_78] : memref<1024x32xbf16, #tpu.memory_space<vmem>>, vector<800x32xbf16>
    %c18 = arith.constant 18 : index
    %c0_79 = arith.constant 0 : index
    %c0_80 = arith.constant 0 : index
    %93 = vector.load %arg3[%c18, %c0_79, %c0_80] : memref<27x32x32xbf16, #tpu.memory_space<vmem>>, vector<1x32x32xbf16>
    %94 = vector.shape_cast %93 : vector<1x32x32xbf16> to vector<32x32xbf16>
    %cst_81 = arith.constant dense<0.000000e+00> : vector<800x32xf32>
    %95 = tpu.matmul %92, %94, %cst_81 {dimension_numbers = #tpu.dot_dimension_numbers<[1], [0], [0], [1], [0, 0, 1, 1], [], []>} : vector<800x32xbf16>, vector<32x32xbf16>, vector<800x32xf32> -> vector<800x32xf32>
    %96 = arith.addf %91, %95 : vector<800x32xf32>
    %c201 = arith.constant 201 : index
    %c0_82 = arith.constant 0 : index
    %97 = vector.load %arg7[%c201, %c0_82] : memref<1024x32xbf16, #tpu.memory_space<vmem>>, vector<800x32xbf16>
    %c19 = arith.constant 19 : index
    %c0_83 = arith.constant 0 : index
    %c0_84 = arith.constant 0 : index
    %98 = vector.load %arg3[%c19, %c0_83, %c0_84] : memref<27x32x32xbf16, #tpu.memory_space<vmem>>, vector<1x32x32xbf16>
    %99 = vector.shape_cast %98 : vector<1x32x32xbf16> to vector<32x32xbf16>
    %cst_85 = arith.constant dense<0.000000e+00> : vector<800x32xf32>
    %100 = tpu.matmul %97, %99, %cst_85 {dimension_numbers = #tpu.dot_dimension_numbers<[1], [0], [0], [1], [0, 0, 1, 1], [], []>} : vector<800x32xbf16>, vector<32x32xbf16>, vector<800x32xf32> -> vector<800x32xf32>
    %101 = arith.addf %96, %100 : vector<800x32xf32>
    %c202 = arith.constant 202 : index
    %c0_86 = arith.constant 0 : index
    %102 = vector.load %arg7[%c202, %c0_86] : memref<1024x32xbf16, #tpu.memory_space<vmem>>, vector<800x32xbf16>
    %c20_87 = arith.constant 20 : index
    %c0_88 = arith.constant 0 : index
    %c0_89 = arith.constant 0 : index
    %103 = vector.load %arg3[%c20_87, %c0_88, %c0_89] : memref<27x32x32xbf16, #tpu.memory_space<vmem>>, vector<1x32x32xbf16>
    %104 = vector.shape_cast %103 : vector<1x32x32xbf16> to vector<32x32xbf16>
    %cst_90 = arith.constant dense<0.000000e+00> : vector<800x32xf32>
    %105 = tpu.matmul %102, %104, %cst_90 {dimension_numbers = #tpu.dot_dimension_numbers<[1], [0], [0], [1], [0, 0, 1, 1], [], []>} : vector<800x32xbf16>, vector<32x32xbf16>, vector<800x32xf32> -> vector<800x32xf32>
    %106 = arith.addf %101, %105 : vector<800x32xf32>
    %c210 = arith.constant 210 : index
    %c0_91 = arith.constant 0 : index
    %107 = vector.load %arg7[%c210, %c0_91] : memref<1024x32xbf16, #tpu.memory_space<vmem>>, vector<800x32xbf16>
    %c21_92 = arith.constant 21 : index
    %c0_93 = arith.constant 0 : index
    %c0_94 = arith.constant 0 : index
    %108 = vector.load %arg3[%c21_92, %c0_93, %c0_94] : memref<27x32x32xbf16, #tpu.memory_space<vmem>>, vector<1x32x32xbf16>
    %109 = vector.shape_cast %108 : vector<1x32x32xbf16> to vector<32x32xbf16>
    %cst_95 = arith.constant dense<0.000000e+00> : vector<800x32xf32>
    %110 = tpu.matmul %107, %109, %cst_95 {dimension_numbers = #tpu.dot_dimension_numbers<[1], [0], [0], [1], [0, 0, 1, 1], [], []>} : vector<800x32xbf16>, vector<32x32xbf16>, vector<800x32xf32> -> vector<800x32xf32>
    %111 = arith.addf %106, %110 : vector<800x32xf32>
    %c211 = arith.constant 211 : index
    %c0_96 = arith.constant 0 : index
    %112 = vector.load %arg7[%c211, %c0_96] : memref<1024x32xbf16, #tpu.memory_space<vmem>>, vector<800x32xbf16>
    %c22_97 = arith.constant 22 : index
    %c0_98 = arith.constant 0 : index
    %c0_99 = arith.constant 0 : index
    %113 = vector.load %arg3[%c22_97, %c0_98, %c0_99] : memref<27x32x32xbf16, #tpu.memory_space<vmem>>, vector<1x32x32xbf16>
    %114 = vector.shape_cast %113 : vector<1x32x32xbf16> to vector<32x32xbf16>
    %cst_100 = arith.constant dense<0.000000e+00> : vector<800x32xf32>
    %115 = tpu.matmul %112, %114, %cst_100 {dimension_numbers = #tpu.dot_dimension_numbers<[1], [0], [0], [1], [0, 0, 1, 1], [], []>} : vector<800x32xbf16>, vector<32x32xbf16>, vector<800x32xf32> -> vector<800x32xf32>
    %116 = arith.addf %111, %115 : vector<800x32xf32>
    %c212 = arith.constant 212 : index
    %c0_101 = arith.constant 0 : index
    %117 = vector.load %arg7[%c212, %c0_101] : memref<1024x32xbf16, #tpu.memory_space<vmem>>, vector<800x32xbf16>
    %c23 = arith.constant 23 : index
    %c0_102 = arith.constant 0 : index
    %c0_103 = arith.constant 0 : index
    %118 = vector.load %arg3[%c23, %c0_102, %c0_103] : memref<27x32x32xbf16, #tpu.memory_space<vmem>>, vector<1x32x32xbf16>
    %119 = vector.shape_cast %118 : vector<1x32x32xbf16> to vector<32x32xbf16>
    %cst_104 = arith.constant dense<0.000000e+00> : vector<800x32xf32>
    %120 = tpu.matmul %117, %119, %cst_104 {dimension_numbers = #tpu.dot_dimension_numbers<[1], [0], [0], [1], [0, 0, 1, 1], [], []>} : vector<800x32xbf16>, vector<32x32xbf16>, vector<800x32xf32> -> vector<800x32xf32>
    %121 = arith.addf %116, %120 : vector<800x32xf32>
    %c220 = arith.constant 220 : index
    %c0_105 = arith.constant 0 : index
    %122 = vector.load %arg7[%c220, %c0_105] : memref<1024x32xbf16, #tpu.memory_space<vmem>>, vector<800x32xbf16>
    %c24 = arith.constant 24 : index
    %c0_106 = arith.constant 0 : index
    %c0_107 = arith.constant 0 : index
    %123 = vector.load %arg3[%c24, %c0_106, %c0_107] : memref<27x32x32xbf16, #tpu.memory_space<vmem>>, vector<1x32x32xbf16>
    %124 = vector.shape_cast %123 : vector<1x32x32xbf16> to vector<32x32xbf16>
    %cst_108 = arith.constant dense<0.000000e+00> : vector<800x32xf32>
    %125 = tpu.matmul %122, %124, %cst_108 {dimension_numbers = #tpu.dot_dimension_numbers<[1], [0], [0], [1], [0, 0, 1, 1], [], []>} : vector<800x32xbf16>, vector<32x32xbf16>, vector<800x32xf32> -> vector<800x32xf32>
    %126 = arith.addf %121, %125 : vector<800x32xf32>
    %c221 = arith.constant 221 : index
    %c0_109 = arith.constant 0 : index
    %127 = vector.load %arg7[%c221, %c0_109] : memref<1024x32xbf16, #tpu.memory_space<vmem>>, vector<800x32xbf16>
    %c25 = arith.constant 25 : index
    %c0_110 = arith.constant 0 : index
    %c0_111 = arith.constant 0 : index
    %128 = vector.load %arg3[%c25, %c0_110, %c0_111] : memref<27x32x32xbf16, #tpu.memory_space<vmem>>, vector<1x32x32xbf16>
    %129 = vector.shape_cast %128 : vector<1x32x32xbf16> to vector<32x32xbf16>
    %cst_112 = arith.constant dense<0.000000e+00> : vector<800x32xf32>
    %130 = tpu.matmul %127, %129, %cst_112 {dimension_numbers = #tpu.dot_dimension_numbers<[1], [0], [0], [1], [0, 0, 1, 1], [], []>} : vector<800x32xbf16>, vector<32x32xbf16>, vector<800x32xf32> -> vector<800x32xf32>
    %131 = arith.addf %126, %130 : vector<800x32xf32>
    %c222 = arith.constant 222 : index
    %c0_113 = arith.constant 0 : index
    %132 = vector.load %arg7[%c222, %c0_113] : memref<1024x32xbf16, #tpu.memory_space<vmem>>, vector<800x32xbf16>
    %c26 = arith.constant 26 : index
    %c0_114 = arith.constant 0 : index
    %c0_115 = arith.constant 0 : index
    %133 = vector.load %arg3[%c26, %c0_114, %c0_115] : memref<27x32x32xbf16, #tpu.memory_space<vmem>>, vector<1x32x32xbf16>
    %134 = vector.shape_cast %133 : vector<1x32x32xbf16> to vector<32x32xbf16>
    %cst_116 = arith.constant dense<0.000000e+00> : vector<800x32xf32>
    %135 = tpu.matmul %132, %134, %cst_116 {dimension_numbers = #tpu.dot_dimension_numbers<[1], [0], [0], [1], [0, 0, 1, 1], [], []>} : vector<800x32xbf16>, vector<32x32xbf16>, vector<800x32xf32> -> vector<800x32xf32>
    %136 = arith.addf %131, %135 : vector<800x32xf32>
    %c0_117 = arith.constant 0 : index
    %c0_118 = arith.constant 0 : index
    %137 = vector.load %arg4[%c0_117, %c0_118] : memref<1x32xf32, #tpu.memory_space<vmem>>, vector<1x32xf32>
    %138 = vector.broadcast %137 : vector<1x32xf32> to vector<800x32xf32>
    %139 = arith.mulf %136, %138 : vector<800x32xf32>
    %c0_119 = arith.constant 0 : index
    %c0_120 = arith.constant 0 : index
    %140 = vector.load %arg5[%c0_119, %c0_120] : memref<1x32xf32, #tpu.memory_space<vmem>>, vector<1x32xf32>
    %141 = vector.broadcast %140 : vector<1x32xf32> to vector<800x32xf32>
    %142 = arith.addf %139, %141 : vector<800x32xf32>
    %cst_121 = arith.constant 0.000000e+00 : f32
    %143 = vector.broadcast %cst_121 : f32 to vector<800x32xf32>
    %144 = arith.maximumf %142, %143 : vector<800x32xf32>
    %145 = arith.truncf %144 : vector<800x32xf32> to vector<800x32xbf16>
    %c0_122 = arith.constant 0 : index
    %c0_123 = arith.constant 0 : index
    %c0_124 = arith.constant 0 : index
    %146 = vector.load %arg6[%c0_122, %c0_123, %c0_124] : memref<1x800x32xbf16, #tpu.memory_space<vmem>>, vector<1x800x32xbf16>
    %147 = vector.shape_cast %146 : vector<1x800x32xbf16> to vector<800x32xbf16>
    %148 = vector.shape_cast %145 : vector<800x32xbf16> to vector<1x800x32xbf16>
    tpu.vector_store %arg6[%c0_122, %c0_123, %c0_124], %148 {strides = array<i32>} : memref<1x800x32xbf16, #tpu.memory_space<vmem>>, vector<1x800x32xbf16>,
    return
  }
  func.func @transform_1(%arg0: i32, %arg1: i32) -> (i32, i32, i32) {
    %c0_i32 = arith.constant 0 : i32
    %c0_i32_0 = arith.constant 0 : i32
    %c0_i32_1 = arith.constant 0 : i32
    %c0_i32_2 = arith.constant 0 : i32
    return %c0_i32, %c0_i32_0, %c0_i32_1 : i32, i32, i32
  }
  func.func @transform_2(%arg0: i32, %arg1: i32) -> (i32, i32) {
    %c0_i32 = arith.constant 0 : i32
    %c0_i32_0 = arith.constant 0 : i32
    %c0_i32_1 = arith.constant 0 : i32
    return %c0_i32, %c0_i32_0 : i32, i32
  }
  func.func @transform_3(%arg0: i32, %arg1: i32) -> (i32, i32) {
    %c0_i32 = arith.constant 0 : i32
    %c0_i32_0 = arith.constant 0 : i32
    %c0_i32_1 = arith.constant 0 : i32
    return %c0_i32, %c0_i32_0 : i32, i32
  }
  func.func @transform_4(%arg0: i32, %arg1: i32) -> (i32, i32, i32) {
    %c0_i32 = arith.constant 0 : i32
    %c0_i32_0 = arith.constant 0 : i32
    return %arg0, %arg1, %c0_i32 : i32, i32, i32
  }
}

module attributes {stable_mosaic.version = 11 : i64} {
  func.func @_gemm_k1_kernel(%arg0: i32, %arg1: memref<512x256xbf16, #tpu.memory_space<vmem>>, %arg2: memref<256x64xbf16, #tpu.memory_space<vmem>>, %arg3: memref<1x64xf32, #tpu.memory_space<vmem>>, %arg4: memref<1x64xf32, #tpu.memory_space<vmem>>, %arg5: memref<512x64xbf16, #tpu.memory_space<vmem>>) attributes {dimension_semantics = [#tpu.dimension_semantics<parallel>], iteration_bounds = array<i64: 1>, scalar_prefetch = 0 : i64, scratch_operands = 0 : i64, tpu.core_type = #tpu.core_type<tc>, window_params = [{transform_indices = @transform_0, window_bounds = array<i64: 512, 256>}, {pipeline_mode = #tpu.pipeline_mode<synchronous>, transform_indices = @transform_1, window_bounds = array<i64: 256, 64>}, {pipeline_mode = #tpu.pipeline_mode<synchronous>, transform_indices = @transform_2, window_bounds = array<i64: 1, 64>}, {pipeline_mode = #tpu.pipeline_mode<synchronous>, transform_indices = @transform_3, window_bounds = array<i64: 1, 64>}, {transform_indices = @transform_4, window_bounds = array<i64: 512, 64>}]} {
    %c0 = arith.constant 0 : index
    %c0_0 = arith.constant 0 : index
    %0 = vector.load %arg1[%c0, %c0_0] : memref<512x256xbf16, #tpu.memory_space<vmem>>, vector<512x256xbf16>
    %c0_1 = arith.constant 0 : index
    %c0_2 = arith.constant 0 : index
    %1 = vector.load %arg2[%c0_1, %c0_2] : memref<256x64xbf16, #tpu.memory_space<vmem>>, vector<256x64xbf16>
    %cst = arith.constant dense<0.000000e+00> : vector<512x64xf32>
    %2 = tpu.matmul %0, %1, %cst {dimension_numbers = #tpu.dot_dimension_numbers<[1], [0], [0], [1], [0, 0, 1, 1], [], []>} : vector<512x256xbf16>, vector<256x64xbf16>, vector<512x64xf32> -> vector<512x64xf32>
    %c0_3 = arith.constant 0 : index
    %c0_4 = arith.constant 0 : index
    %3 = vector.load %arg3[%c0_3, %c0_4] : memref<1x64xf32, #tpu.memory_space<vmem>>, vector<1x64xf32>
    %4 = vector.broadcast %3 : vector<1x64xf32> to vector<512x64xf32>
    %5 = arith.mulf %2, %4 : vector<512x64xf32>
    %c0_5 = arith.constant 0 : index
    %c0_6 = arith.constant 0 : index
    %6 = vector.load %arg4[%c0_5, %c0_6] : memref<1x64xf32, #tpu.memory_space<vmem>>, vector<1x64xf32>
    %7 = vector.broadcast %6 : vector<1x64xf32> to vector<512x64xf32>
    %8 = arith.addf %5, %7 : vector<512x64xf32>
    %cst_7 = arith.constant 0.000000e+00 : f32
    %9 = vector.broadcast %cst_7 : f32 to vector<512x64xf32>
    %10 = arith.maximumf %8, %9 : vector<512x64xf32>
    %11 = arith.truncf %10 : vector<512x64xf32> to vector<512x64xbf16>
    %c0_8 = arith.constant 0 : index
    %c0_9 = arith.constant 0 : index
    %12 = vector.load %arg5[%c0_8, %c0_9] : memref<512x64xbf16, #tpu.memory_space<vmem>>, vector<512x64xbf16>
    tpu.vector_store %arg5[%c0_8, %c0_9], %11 {strides = array<i32>} : memref<512x64xbf16, #tpu.memory_space<vmem>>, vector<512x64xbf16>,
    return
  }
  func.func @transform_0(%arg0: i32) -> (i32, i32) {
    %c0_i32 = arith.constant 0 : i32
    %c0_i32_0 = arith.constant 0 : i32
    return %arg0, %c0_i32 : i32, i32
  }
  func.func @transform_1(%arg0: i32) -> (i32, i32) {
    %c0_i32 = arith.constant 0 : i32
    %c0_i32_0 = arith.constant 0 : i32
    %c0_i32_1 = arith.constant 0 : i32
    return %c0_i32, %c0_i32_0 : i32, i32
  }
  func.func @transform_2(%arg0: i32) -> (i32, i32) {
    %c0_i32 = arith.constant 0 : i32
    %c0_i32_0 = arith.constant 0 : i32
    %c0_i32_1 = arith.constant 0 : i32
    return %c0_i32, %c0_i32_0 : i32, i32
  }
  func.func @transform_3(%arg0: i32) -> (i32, i32) {
    %c0_i32 = arith.constant 0 : i32
    %c0_i32_0 = arith.constant 0 : i32
    %c0_i32_1 = arith.constant 0 : i32
    return %c0_i32, %c0_i32_0 : i32, i32
  }
  func.func @transform_4(%arg0: i32) -> (i32, i32) {
    %c0_i32 = arith.constant 0 : i32
    %c0_i32_0 = arith.constant 0 : i32
    return %arg0, %c0_i32 : i32, i32
  }
}

</mosaic_0001>

<bundles_post_ra>
// kernel: tpu_custom_call.1
= control target key start
LH: loop header
LB: loop body
LE: loop exit
PB: predicated region body
PF: predicated region fallthrough
CT: control target
= control target key end

     0   :  { %9 = vsyncpa [#allocation3], 0  ;;  %s1745_s15 = smov [#allocation2]   ;;  %s2251_s0 = inlined_call_operand.hbm [shape: bf16[512,256], index: 0, kind: input, shape index: {}]   ;;  %s2252_s1 = inlined_call_operand.vmem [shape: bf16[256,64], index: 1, kind: input, shape index: {}]   ;;  %s2253_s2 = inlined_call_operand.vmem [shape: f32[1,64], index: 2, kind: input, shape index: {}]   ;;  %s2254_s3 = inlined_call_operand.vmem [shape: f32[1,64], index: 3, kind: input, shape index: {}]   ;;  %s2255_s4 = inlined_call_operand.vmem [shape: bf16[512,64], index: 4, kind: output, shape index: {}]  }
   0x1   :  { %s15_s16 = sshll.u32 %s1745_s15, 4  ;;  %s16_s16 = int_to_ptr.vmem [resolvable:$true] %s15_s16 }
   0x2   :  { %s1731_s17 = scalar_lea.vmem %s16_s16, 8192  ;;  %p1736_p1 = scmp.lt.s32.totalorder %s16_s16, %s16_s16 }
   0x3   :  { %p1732_p0 = scmp.ne.s32.totalorder %s16_s16, %s1731_s17  ;;  %p1737_p2 = scmp.lt.s32.totalorder %s1731_s17, %s1731_s17 }
   0x5   :  { %p1738_p3 = por %p1737_p2, %p1736_p1 }
   0x7   :  { %p1739_p4 = pnand %p1738_p3, %p1732_p0 }
   0x9   :  { %1742 = shalt.err (!%p1739_p4)
}
   0xa   :  { %s1746_s18 = smov 128   ;;  %s1747_s19 = smov 8  }
   0xb   :  { %21 = dma.hbm_to_vmem [thread:$0]  %s2251_s0, 8192, %s16_s16, [#allocation3], %s1746_s18, %s1746_s18, %s1747_s19  }
   0xc   :  { %1743 = dma.done.wait [#allocation3], 8192  }
   0xd   :  { %1744 = vsyncadd [#allocation3], 4294959104  ;;  %v1748_v0 = vmov 0   ;;  %v1611_v1 = vld [vmem:[%s2252_s1 + $0x38] sm:$0xff]   ;;  %v1612_v2 = vld [vmem:[%s2252_s1 + $0x30] sm:$0xff]   ;;  %vm1295_vm0 = vcmask 519168  }
   0xe   :  { %544 = vmatprep.subr.bf16.mxu0 %v1748_v0  ;;  %1575 = vmatprep.subr.bf16.mxu1 %v1748_v0  ;;  %v1613_v3 = vld [vmem:[%s2252_s1 + $0x28] sm:$0xff]   ;;  %v1614_v4 = vld [vmem:[%s2252_s1 + $0x20] sm:$0xff]   ;;  %v1615_v5 = vld [vmem:[%s2252_s1 + $0x18] sm:$0xff]  }
   0xf   :  { %545 = vmatpush1.bf16.msra.mxu0 %v1611_v1  ;;  %1591 = vmatpush1.bf16.msra.mxu1 %v1611_v1  ;;  %v1629_v6 = vld [vmem:[#allocation2 + $0x4] ss:$8 sps:$4 sm:$0xff]   ;;  %v1616_v7 = vld [vmem:[%s2252_s1 + $0x10] sm:$0xff]   ;;  %v1619_v11 = vld [vmem:[%s2252_s1 + $0x78] sm:$0xff]  }
  0x10   :  { %546 = vmatprep.subr.bf16.mxu0 %v1748_v0  ;;  %1576 = vmatprep.subr.bf16.mxu1 %v1748_v0  ;;  %v1632_v8 = vld [vmem:[#allocation2 + $0x104] ss:$8 sps:$4 sm:$0xff]   ;;  %v1620_v12 = vld [vmem:[%s2252_s1 + $0x70] sm:$0xff]   ;;  %v1623_v15 = vld [vmem:[%s2252_s1 + $0x58] sm:$0xff]  }
  0x11   :  { %576 = vmatprep.mubr.bf16.mxu0 %v1629_v6  ;;  %704 = vmatprep.mubr.bf16.mxu1 %v1632_v8  ;;  %v1617_v9 = vld [vmem:[%s2252_s1 + $0x8] sm:$0xff]   ;;  %v1618_v10 = vld [vmem:[%s2252_s1] sm:$0xff]   ;;  %v1624_v16 = vld [vmem:[%s2252_s1 + $0x50] sm:$0xff]  }
  0x12   :  { %v1621_v13 = vld [vmem:[%s2252_s1 + $0x68] sm:$0xff]   ;;  %v1622_v14 = vld [vmem:[%s2252_s1 + $0x60] sm:$0xff]   ;;  %v1633_v21 = vld [vmem:[#allocation2 + $0x14] ss:$8 sps:$4 sm:$0xff]  }
  0x13   :  { %547 = vmatpush1.bf16.msra.mxu0 %v1612_v2  ;;  %1592 = vmatpush1.bf16.msra.mxu1 %v1612_v2  ;;  %v1625_v17 = vld [vmem:[%s2252_s1 + $0x48] sm:$0xff]   ;;  %v1626_v18 = vld [vmem:[%s2252_s1 + $0x40] sm:$0xff]   ;;  %v1635_v22 = vld [vmem:[#allocation2 + $0x114] ss:$8 sps:$4 sm:$0xff]  }
  0x14   :  { %548 = vmatprep.subr.bf16.mxu0 %v1748_v0  ;;  %1577 = vmatprep.subr.bf16.mxu1 %v1748_v0  ;;  %v1627_v19 = vld [vmem:[#allocation2] ss:$8 sps:$4 sm:$0xff]   ;;  %v1637_v23 = vld [vmem:[#allocation2 + $0x10] ss:$8 sps:$4 sm:$0xff]   ;;  %v1639_v25 = vld [vmem:[#allocation2 + $0x24] ss:$8 sps:$4 sm:$0xff]  }
  0x15   :  { %v1630_v20 = vld [vmem:[#allocation2 + $0x100] ss:$8 sps:$4 sm:$0xff]   ;;  %v1638_v24 = vld [vmem:[#allocation2 + $0x110] ss:$8 sps:$4 sm:$0xff]   ;;  %v1641_v26 = vld [vmem:[#allocation2 + $0x124] ss:$8 sps:$4 sm:$0xff]  }
  0x16   :  { %v1643_v27 = vld [vmem:[#allocation2 + $0x20] ss:$8 sps:$4 sm:$0xff]   ;;  %v1645_v29 = vld [vmem:[#allocation2 + $0x34] ss:$8 sps:$4 sm:$0xff]   ;;  %v1649_v31 = vld [vmem:[#allocation2 + $0x30] ss:$8 sps:$4 sm:$0xff]  }
  0x17   :  { %549 = vmatpush1.bf16.msra.mxu0 %v1613_v3  ;;  %1593 = vmatpush1.bf16.msra.mxu1 %v1613_v3  ;;  %v1644_v28 = vld [vmem:[#allocation2 + $0x120] ss:$8 sps:$4 sm:$0xff]   ;;  %v1647_v30 = vld [vmem:[#allocation2 + $0x134] ss:$8 sps:$4 sm:$0xff]   ;;  %v1650_v32 = vld [vmem:[#allocation2 + $0x130] ss:$8 sps:$4 sm:$0xff]  }
  0x18   :  { %550 = vmatprep.subr.bf16.mxu0 %v1748_v0  ;;  %1578 = vmatprep.subr.bf16.mxu1 %v1748_v0  ;;  %v1651_v33 = vld [vmem:[#allocation2 + $0x44] ss:$8 sps:$4 sm:$0xff]   ;;  %v1655_v35 = vld [vmem:[#allocation2 + $0x40] ss:$8 sps:$4 sm:$0xff]   ;;  %v1657_v37 = vld [vmem:[#allocation2 + $0x54] ss:$8 sps:$4 sm:$0xff]  }
  0x19   :  { %v1653_v34 = vld [vmem:[#allocation2 + $0x144] ss:$8 sps:$4 sm:$0xff]   ;;  %v1656_v36 = vld [vmem:[#allocation2 + $0x140] ss:$8 sps:$4 sm:$0xff]   ;;  %v1659_v38 = vld [vmem:[#allocation2 + $0x154] ss:$8 sps:$4 sm:$0xff]  }
  0x1a   :  { %v1661_v39 = vld [vmem:[#allocation2 + $0x50] ss:$8 sps:$4 sm:$0xff]   ;;  %v1663_v41 = vld [vmem:[#allocation2 + $0x64] ss:$8 sps:$4 sm:$0xff]   ;;  %v1667_v43 = vld [vmem:[#allocation2 + $0x60] ss:$8 sps:$4 sm:$0xff]  }
  0x1b   :  { %551 = vmatpush1.bf16.msra.mxu0 %v1614_v4  ;;  %1594 = vmatpush1.bf16.msra.mxu1 %v1614_v4  ;;  %v1662_v40 = vld [vmem:[#allocation2 + $0x150] ss:$8 sps:$4 sm:$0xff]   ;;  %v1665_v42 = vld [vmem:[#allocation2 + $0x164] ss:$8 sps:$4 sm:$0xff]   ;;  %v1668_v44 = vld [vmem:[#allocation2 + $0x160] ss:$8 sps:$4 sm:$0xff]  }
  0x1c   :  { %552 = vmatprep.subr.bf16.mxu0 %v1748_v0  ;;  %1579 = vmatprep.subr.bf16.mxu1 %v1748_v0  ;;  %v1669_v45 = vld [vmem:[#allocation2 + $0x74] ss:$8 sps:$4 sm:$0xff]   ;;  %v1673_v47 = vld [vmem:[#allocation2 + $0x70] ss:$8 sps:$4 sm:$0xff]   ;;  %v1675_v49 = vld [vmem:[#allocation2 + $0x84] ss:$8 sps:$4 sm:$0xff]  }
  0x1d   :  { %v1671_v46 = vld [vmem:[#allocation2 + $0x174] ss:$8 sps:$4 sm:$0xff]   ;;  %v1674_v48 = vld [vmem:[#allocation2 + $0x170] ss:$8 sps:$4 sm:$0xff]   ;;  %v1677_v50 = vld [vmem:[#allocation2 + $0x184] ss:$8 sps:$4 sm:$0xff]  }
  0x1e   :  { %v1679_v51 = vld [vmem:[#allocation2 + $0x80] ss:$8 sps:$4 sm:$0xff]   ;;  %v1681_v53 = vld [vmem:[#allocation2 + $0x94] ss:$8 sps:$4 sm:$0xff]   ;;  %v1685_v55 = vld [vmem:[#allocation2 + $0x90] ss:$8 sps:$4 sm:$0xff]  }
  0x1f   :  { %553 = vmatpush1.bf16.msra.mxu0 %v1615_v5  ;;  %1595 = vmatpush1.bf16.msra.mxu1 %v1615_v5  ;;  %v1680_v52 = vld [vmem:[#allocation2 + $0x180] ss:$8 sps:$4 sm:$0xff]   ;;  %v1683_v54 = vld [vmem:[#allocation2 + $0x194] ss:$8 sps:$4 sm:$0xff]   ;;  %v1686_v56 = vld [vmem:[#allocation2 + $0x190] ss:$8 sps:$4 sm:$0xff]  }
  0x20   :  { %554 = vmatprep.subr.bf16.mxu0 %v1748_v0  ;;  %1580 = vmatprep.subr.bf16.mxu1 %v1748_v0  ;;  %v1687_v57 = vld [vmem:[#allocation2 + $0xa4] ss:$8 sps:$4 sm:$0xff]   ;;  %v1691_v59 = vld [vmem:[#allocation2 + $0xa0] ss:$8 sps:$4 sm:$0xff]   ;;  %v1693_v61 = vld [vmem:[#allocation2 + $0xb4] ss:$8 sps:$4 sm:$0xff]  }
  0x21   :  { %v1689_v58 = vld [vmem:[#allocation2 + $0x1a4] ss:$8 sps:$4 sm:$0xff]   ;;  %v1692_v60 = vld [vmem:[#allocation2 + $0x1a0] ss:$8 sps:$4 sm:$0xff]   ;;  %v1695_v62 = vld [vmem:[#allocation2 + $0x1b4] ss:$8 sps:$4 sm:$0xff]  }
  0x22   :  { %v1697_v63 = vld [vmem:[#allocation2 + $0xb0] ss:$8 sps:$4 sm:$0xff]   ;;  %v1699_v1 = vld [vmem:[#allocation2 + $0xc4] ss:$8 sps:$4 sm:$0xff]   ;;  %v1703_v3 = vld [vmem:[#allocation2 + $0xc0] ss:$8 sps:$4 sm:$0xff]  }
  0x23   :  { %555 = vmatpush1.bf16.msra.mxu0 %v1616_v7  ;;  %1596 = vmatpush1.bf16.msra.mxu1 %v1616_v7  ;;  %v1701_v2 = vld [vmem:[#allocation2 + $0x1c4] ss:$8 sps:$4 sm:$0xff]   ;;  %v1704_v4 = vld [vmem:[#allocation2 + $0x1c0] ss:$8 sps:$4 sm:$0xff]   ;;  %v1705_v5 = vld [vmem:[#allocation2 + $0xd4] ss:$8 sps:$4 sm:$0xff]  }
  0x24   :  { %556 = vmatprep.subr.bf16.mxu0 %v1748_v0  ;;  %1581 = vmatprep.subr.bf16.mxu1 %v1748_v0  ;;  %v1707_v6 = vld [vmem:[#allocation2 + $0x1d4] ss:$8 sps:$4 sm:$0xff]   ;;  %v1709_v7 = vld [vmem:[#allocation2 + $0xd0] ss:$8 sps:$4 sm:$0xff]  }
  0x25   :  { %v1710_v8 = vld [vmem:[#allocation2 + $0x1d0] ss:$8 sps:$4 sm:$0xff]  }
  0x27   :  { %557 = vmatpush1.bf16.msra.mxu0 %v1617_v9  ;;  %1597 = vmatpush1.bf16.msra.mxu1 %v1617_v9  ;;  %v1711_v9 = vld [vmem:[#allocation2 + $0xe4] ss:$8 sps:$4 sm:$0xff]  }
  0x28   :  { %558 = vmatprep.subr.bf16.mxu0 %v1748_v0  ;;  %1582 = vmatprep.subr.bf16.mxu1 %v1748_v0 }
  0x2b   :  { %559 = vmatpush1.bf16.msra.mxu0 %v1618_v10  ;;  %1598 = vmatpush1.bf16.msra.mxu1 %v1618_v10  ;;  %v1713_v10 = vld [vmem:[#allocation2 + $0x1e4] ss:$8 sps:$4 sm:$0xff]  }
  0x2c   :  { %560 = vmatprep.subr.bf16.mxu0 %v1748_v0  ;;  %1583 = vmatprep.subr.bf16.mxu1 %v1748_v0 }
  0x2f   :  { %561 = vmatpush2.bf16.msra.mxu0 %v1619_v11  ;;  %1599 = vmatpush2.bf16.msra.mxu1 %v1619_v11  ;;  %v1715_v11 = vld [vmem:[#allocation2 + $0xe0] ss:$8 sps:$4 sm:$0xff]  }
  0x30   :  { %562 = vmatprep.subr.bf16.mxu0 %v1748_v0  ;;  %1584 = vmatprep.subr.bf16.mxu1 %v1748_v0 }
  0x33   :  { %563 = vmatpush2.bf16.msra.mxu0 %v1620_v12  ;;  %1600 = vmatpush2.bf16.msra.mxu1 %v1620_v12  ;;  %v1716_v12 = vld [vmem:[#allocation2 + $0x1e0] ss:$8 sps:$4 sm:$0xff]  }
  0x34   :  { %564 = vmatprep.subr.bf16.mxu0 %v1748_v0  ;;  %1585 = vmatprep.subr.bf16.mxu1 %v1748_v0 }
  0x37   :  { %565 = vmatpush2.bf16.msra.mxu0 %v1621_v13  ;;  %1601 = vmatpush2.bf16.msra.mxu1 %v1621_v13  ;;  %v1717_v13 = vld [vmem:[#allocation2 + $0xf4] ss:$8 sps:$4 sm:$0xff]  }
  0x38   :  { %566 = vmatprep.subr.bf16.mxu0 %v1748_v0  ;;  %1586 = vmatprep.subr.bf16.mxu1 %v1748_v0 }
  0x3b   :  { %567 = vmatpush2.bf16.msra.mxu0 %v1622_v14  ;;  %1602 = vmatpush2.bf16.msra.mxu1 %v1622_v14  ;;  %v1719_v14 = vld [vmem:[#allocation2 + $0x1f4] ss:$8 sps:$4 sm:$0xff]  }
  0x3c   :  { %568 = vmatprep.subr.bf16.mxu0 %v1748_v0  ;;  %1587 = vmatprep.subr.bf16.mxu1 %v1748_v0 }
  0x3f   :  { %569 = vmatpush2.bf16.msra.mxu0 %v1623_v15  ;;  %1603 = vmatpush2.bf16.msra.mxu1 %v1623_v15  ;;  %v1721_v15 = vld [vmem:[#allocation2 + $0xf0] ss:$8 sps:$4 sm:$0xff]  }
  0x40   :  { %570 = vmatprep.subr.bf16.mxu0 %v1748_v0  ;;  %1588 = vmatprep.subr.bf16.mxu1 %v1748_v0 }
  0x43   :  { %571 = vmatpush2.bf16.msra.mxu0 %v1624_v16  ;;  %1604 = vmatpush2.bf16.msra.mxu1 %v1624_v16  ;;  %v1722_v16 = vld [vmem:[#allocation2 + $0x1f0] ss:$8 sps:$4 sm:$0xff]  }
  0x44   :  { %572 = vmatprep.subr.bf16.mxu0 %v1748_v0  ;;  %1589 = vmatprep.subr.bf16.mxu1 %v1748_v0 }
  0x47   :  { %573 = vmatpush2.bf16.msra.mxu0 %v1625_v17  ;;  %1605 = vmatpush2.bf16.msra.mxu1 %v1625_v17  ;;  %v1860_v17 = vld [vmem:[%s2253_s2] ss:$0 sm:$0xff] }
  0x48   :  { %574 = vmatprep.subr.bf16.mxu0 %v1748_v0  ;;  %1590 = vmatprep.subr.bf16.mxu1 %v1748_v0  ;;  %v1698_v0 = vld [vmem:[#allocation2 + $0x1b0] ss:$8 sps:$4 sm:$0xff]  }
  0x4b   :  { %575 = vmatpush2.bf16.msra.mxu0 %v1626_v18  ;;  %1606 = vmatpush2.bf16.msra.mxu1 %v1626_v18 }
  0x4e   :  { %577 = vmatmul.mubr.bf16.vlgmr.msra.gmra.mxu0 %v1627_v19  ;;  %705 = vmatmul.mubr.bf16.vlgmr.msra.gmra.mxu1 %v1630_v20  ;;  %v1865_v19 = vld [vmem:[%s2254_s3] ss:$0 sm:$0xff] }
  0x4f   :  { %584 = vmatprep.mubr.bf16.mxu0 %v1633_v21  ;;  %712 = vmatprep.mubr.bf16.mxu1 %v1635_v22 }
  0x56   :  { %585 = vmatmul.mubr.bf16.gmra.mxu0 %v1637_v23  ;;  %713 = vmatmul.mubr.bf16.gmra.mxu1 %v1638_v24 }
  0x57   :  { %592 = vmatprep.mubr.bf16.mxu0 %v1639_v25  ;;  %720 = vmatprep.mubr.bf16.mxu1 %v1641_v26 }
  0x5e   :  { %593 = vmatmul.mubr.bf16.gmra.mxu0 %v1643_v27  ;;  %721 = vmatmul.mubr.bf16.gmra.mxu1 %v1644_v28 }
  0x5f   :  { %600 = vmatprep.mubr.bf16.mxu0 %v1645_v29  ;;  %728 = vmatprep.mubr.bf16.mxu1 %v1647_v30 }
  0x66   :  { %601 = vmatmul.mubr.bf16.gmra.mxu0 %v1649_v31  ;;  %729 = vmatmul.mubr.bf16.gmra.mxu1 %v1650_v32 }
  0x67   :  { %608 = vmatprep.mubr.bf16.mxu0 %v1651_v33  ;;  %736 = vmatprep.mubr.bf16.mxu1 %v1653_v34 }
  0x6e   :  { %609 = vmatmul.mubr.bf16.gmra.mxu0 %v1655_v35  ;;  %737 = vmatmul.mubr.bf16.gmra.mxu1 %v1656_v36 }
  0x6f   :  { %616 = vmatprep.mubr.bf16.mxu0 %v1657_v37  ;;  %744 = vmatprep.mubr.bf16.mxu1 %v1659_v38 }
  0x76   :  { %617 = vmatmul.mubr.bf16.gmra.mxu0 %v1661_v39  ;;  %745 = vmatmul.mubr.bf16.gmra.mxu1 %v1662_v40 }
  0x77   :  { %624 = vmatprep.mubr.bf16.mxu0 %v1663_v41  ;;  %752 = vmatprep.mubr.bf16.mxu1 %v1665_v42 }
  0x7e   :  { %625 = vmatmul.mubr.bf16.gmra.mxu0 %v1667_v43  ;;  %753 = vmatmul.mubr.bf16.gmra.mxu1 %v1668_v44 }
  0x7f   :  { %632 = vmatprep.mubr.bf16.mxu0 %v1669_v45  ;;  %760 = vmatprep.mubr.bf16.mxu1 %v1671_v46 }
  0x86   :  { %633 = vmatmul.mubr.bf16.gmra.mxu0 %v1673_v47  ;;  %761 = vmatmul.mubr.bf16.gmra.mxu1 %v1674_v48 }
  0x87   :  { %640 = vmatprep.mubr.bf16.mxu0 %v1675_v49  ;;  %768 = vmatprep.mubr.bf16.mxu1 %v1677_v50 }
  0x8e   :  { %641 = vmatmul.mubr.bf16.gmra.mxu0 %v1679_v51  ;;  %769 = vmatmul.mubr.bf16.gmra.mxu1 %v1680_v52 }
  0x8f   :  { %648 = vmatprep.mubr.bf16.mxu0 %v1681_v53  ;;  %776 = vmatprep.mubr.bf16.mxu1 %v1683_v54 }
  0x96   :  { %649 = vmatmul.mubr.bf16.gmra.mxu0 %v1685_v55  ;;  %777 = vmatmul.mubr.bf16.gmra.mxu1 %v1686_v56 }
  0x97   :  { %656 = vmatprep.mubr.bf16.mxu0 %v1687_v57  ;;  %784 = vmatprep.mubr.bf16.mxu1 %v1689_v58 }
  0x9e   :  { %657 = vmatmul.mubr.bf16.gmra.mxu0 %v1691_v59  ;;  %785 = vmatmul.mubr.bf16.gmra.mxu1 %v1692_v60 }
  0x9f   :  { %664 = vmatprep.mubr.bf16.mxu0 %v1693_v61  ;;  %792 = vmatprep.mubr.bf16.mxu1 %v1695_v62 }
  0xa6   :  { %665 = vmatmul.mubr.bf16.gmra.mxu0 %v1697_v63  ;;  %793 = vmatmul.mubr.bf16.gmra.mxu1 %v1698_v0 }
  0xa7   :  { %672 = vmatprep.mubr.bf16.mxu0 %v1699_v1  ;;  %800 = vmatprep.mubr.bf16.mxu1 %v1701_v2 }
  0xae   :  { %673 = vmatmul.mubr.bf16.gmra.mxu0 %v1703_v3  ;;  %801 = vmatmul.mubr.bf16.gmra.mxu1 %v1704_v4 }
  0xaf   :  { %680 = vmatprep.mubr.bf16.mxu0 %v1705_v5  ;;  %808 = vmatprep.mubr.bf16.mxu1 %v1707_v6 }
  0xb6   :  { %681 = vmatmul.mubr.bf16.gmra.mxu0 %v1709_v7  ;;  %809 = vmatmul.mubr.bf16.gmra.mxu1 %v1710_v8 }
  0xb7   :  { %688 = vmatprep.mubr.bf16.mxu0 %v1711_v9  ;;  %816 = vmatprep.mubr.bf16.mxu1 %v1713_v10 }
  0xbe   :  { %689 = vmatmul.mubr.bf16.gmra.mxu0 %v1715_v11  ;;  %817 = vmatmul.mubr.bf16.gmra.mxu1 %v1716_v12 }
  0xbf   :  { %696 = vmatprep.mubr.bf16.mxu0 %v1717_v13  ;;  %824 = vmatprep.mubr.bf16.mxu1 %v1719_v14 }
  0xc6   :  { %697 = vmatmul.mubr.bf16.gmra.mxu0 %v1721_v15  ;;  %825 = vmatmul.mubr.bf16.gmra.mxu1 %v1722_v16 }
 0x10e   :  { %v578_v18 = vpop.f32.mrf.mxu0  ;;  %v706_v20 = vpop.f32.mrf.mxu1 }
 0x10f   :  { %v840_v21 = vmul.f32 %v1860_v17, %v578_v18  ;;  %v872_v22 = vmul.f32 %v1860_v17, %v706_v20 }
 0x110   :  { %v580_v23 = vpop.f32.mrf.mxu0  ;;  %v708_v24 = vpop.f32.mrf.mxu1 }
 0x111   :  { %v911_v25 = vadd.f32 %v1865_v19, %v840_v21  ;;  %v943_v26 = vadd.f32 %v1865_v19, %v872_v22 }
 0x112   :  { %v581_v27 = vpop.f32.mrf.mxu0  ;;  %v709_v28 = vpop.f32.mrf.mxu1 }
 0x113   :  { %v975_v29 = vmax.f32 %v911_v25, 0.0  ;;  %v1007_v30 = vmax.f32 %v943_v26, 0.0  ;;  %v841_v31 = vmul.f32 %v1860_v17, %v581_v27  ;;  %v873_v32 = vmul.f32 %v1860_v17, %v709_v28 }
 0x114   :  { %v583_v33 = vpop.f32.mrf.mxu0  ;;  %v711_v34 = vpop.f32.mrf.mxu1 }
 0x115   :  { %v1511_v35 = vpack.c.bf16 %v975_v29, %v975_v29  ;;  %v1543_v36 = vpack.c.bf16 %v1007_v30, %v1007_v30  ;;  %v912_v37 = vadd.f32 %v1865_v19, %v841_v31  ;;  %v944_v38 = vadd.f32 %v1865_v19, %v873_v32 }
 0x116   :  { %v586_v39 = vpop.f32.mrf.mxu0  ;;  %v714_v40 = vpop.f32.mrf.mxu1 }
 0x117   :  { %1296 = vst.msk [vmem:[%s2255_s4] sm:$0xf] %vm1295_vm0, %v1511_v35  ;;  %1328 = vst.msk [vmem:[%s2255_s4 + $0x80] sm:$0xf] %vm1295_vm0, %v1543_v36  ;;  %v976_v41 = vmax.f32 %v912_v37, 0.0  ;;  %v1008_v42 = vmax.f32 %v944_v38, 0.0  ;;  %v842_v43 = vmul.f32 %v1860_v17, %v586_v39  ;;  %v874_v44 = vmul.f32 %v1860_v17, %v714_v40 }
 0x118   :  { %v588_v45 = vpop.f32.mrf.mxu0  ;;  %v716_v46 = vpop.f32.mrf.mxu1 }
 0x119   :  { %v1512_v47 = vpack.c.bf16 %v976_v41, %v976_v41  ;;  %v1544_v48 = vpack.c.bf16 %v1008_v42, %v1008_v42  ;;  %v913_v49 = vadd.f32 %v1865_v19, %v842_v43  ;;  %v945_v50 = vadd.f32 %v1865_v19, %v874_v44 }
 0x11a   :  { %v589_v51 = vpop.f32.mrf.mxu0  ;;  %v717_v52 = vpop.f32.mrf.mxu1 }
 0x11b   :  { %1297 = vst.msk [vmem:[%s2255_s4 + $0x4] sm:$0xf] %vm1295_vm0, %v1512_v47  ;;  %1329 = vst.msk [vmem:[%s2255_s4 + $0x84] sm:$0xf] %vm1295_vm0, %v1544_v48  ;;  %v977_v53 = vmax.f32 %v913_v49, 0.0  ;;  %v1009_v54 = vmax.f32 %v945_v50, 0.0  ;;  %v843_v55 = vmul.f32 %v1860_v17, %v589_v51  ;;  %v875_v56 = vmul.f32 %v1860_v17, %v717_v52 }
 0x11c   :  { %v591_v57 = vpop.f32.mrf.mxu0  ;;  %v719_v58 = vpop.f32.mrf.mxu1 }
 0x11d   :  { %v1513_v59 = vpack.c.bf16 %v977_v53, %v977_v53  ;;  %v1545_v60 = vpack.c.bf16 %v1009_v54, %v1009_v54  ;;  %v914_v61 = vadd.f32 %v1865_v19, %v843_v55  ;;  %v946_v62 = vadd.f32 %v1865_v19, %v875_v56 }
 0x11e   :  { %v594_v63 = vpop.f32.mrf.mxu0  ;;  %v722_v0 = vpop.f32.mrf.mxu1 }
 0x11f   :  { %1298 = vst.msk [vmem:[%s2255_s4 + $0x8] sm:$0xf] %vm1295_vm0, %v1513_v59  ;;  %1330 = vst.msk [vmem:[%s2255_s4 + $0x88] sm:$0xf] %vm1295_vm0, %v1545_v60  ;;  %v978_v1 = vmax.f32 %v914_v61, 0.0  ;;  %v1010_v2 = vmax.f32 %v946_v62, 0.0  ;;  %v844_v3 = vmul.f32 %v1860_v17, %v594_v63  ;;  %v876_v4 = vmul.f32 %v1860_v17, %v722_v0 }
 0x120   :  { %v596_v5 = vpop.f32.mrf.mxu0  ;;  %v724_v6 = vpop.f32.mrf.mxu1 }
 0x121   :  { %v1514_v7 = vpack.c.bf16 %v978_v1, %v978_v1  ;;  %v1546_v8 = vpack.c.bf16 %v1010_v2, %v1010_v2  ;;  %v915_v9 = vadd.f32 %v1865_v19, %v844_v3  ;;  %v947_v10 = vadd.f32 %v1865_v19, %v876_v4 }
 0x122   :  { %v597_v11 = vpop.f32.mrf.mxu0  ;;  %v725_v12 = vpop.f32.mrf.mxu1 }
 0x123   :  { %1299 = vst.msk [vmem:[%s2255_s4 + $0xc] sm:$0xf] %vm1295_vm0, %v1514_v7  ;;  %1331 = vst.msk [vmem:[%s2255_s4 + $0x8c] sm:$0xf] %vm1295_vm0, %v1546_v8  ;;  %v979_v13 = vmax.f32 %v915_v9, 0.0  ;;  %v1011_v14 = vmax.f32 %v947_v10, 0.0  ;;  %v845_v15 = vmul.f32 %v1860_v17, %v597_v11  ;;  %v877_v16 = vmul.f32 %v1860_v17, %v725_v12 }
 0x124   :  { %v599_v18 = vpop.f32.mrf.mxu0  ;;  %v727_v20 = vpop.f32.mrf.mxu1 }
 0x125   :  { %v1515_v21 = vpack.c.bf16 %v979_v13, %v979_v13  ;;  %v1547_v22 = vpack.c.bf16 %v1011_v14, %v1011_v14  ;;  %v916_v23 = vadd.f32 %v1865_v19, %v845_v15  ;;  %v948_v24 = vadd.f32 %v1865_v19, %v877_v16 }
 0x126   :  { %v602_v25 = vpop.f32.mrf.mxu0  ;;  %v730_v26 = vpop.f32.mrf.mxu1 }
 0x127   :  { %1300 = vst.msk [vmem:[%s2255_s4 + $0x10] sm:$0xf] %vm1295_vm0, %v1515_v21  ;;  %1332 = vst.msk [vmem:[%s2255_s4 + $0x90] sm:$0xf] %vm1295_vm0, %v1547_v22  ;;  %v980_v27 = vmax.f32 %v916_v23, 0.0  ;;  %v1012_v28 = vmax.f32 %v948_v24, 0.0  ;;  %v846_v29 = vmul.f32 %v1860_v17, %v602_v25  ;;  %v878_v30 = vmul.f32 %v1860_v17, %v730_v26 }
 0x128   :  { %v604_v31 = vpop.f32.mrf.mxu0  ;;  %v732_v32 = vpop.f32.mrf.mxu1 }
 0x129   :  { %v1516_v33 = vpack.c.bf16 %v980_v27, %v980_v27  ;;  %v1548_v34 = vpack.c.bf16 %v1012_v28, %v1012_v28  ;;  %v917_v35 = vadd.f32 %v1865_v19, %v846_v29  ;;  %v949_v36 = vadd.f32 %v1865_v19, %v878_v30 }
 0x12a   :  { %v605_v37 = vpop.f32.mrf.mxu0  ;;  %v733_v38 = vpop.f32.mrf.mxu1 }
 0x12b   :  { %1301 = vst.msk [vmem:[%s2255_s4 + $0x14] sm:$0xf] %vm1295_vm0, %v1516_v33  ;;  %1333 = vst.msk [vmem:[%s2255_s4 + $0x94] sm:$0xf] %vm1295_vm0, %v1548_v34  ;;  %v981_v39 = vmax.f32 %v917_v35, 0.0  ;;  %v1013_v40 = vmax.f32 %v949_v36, 0.0  ;;  %v847_v41 = vmul.f32 %v1860_v17, %v605_v37  ;;  %v879_v42 = vmul.f32 %v1860_v17, %v733_v38 }
 0x12c   :  { %v607_v43 = vpop.f32.mrf.mxu0  ;;  %v735_v44 = vpop.f32.mrf.mxu1 }
 0x12d   :  { %v1517_v45 = vpack.c.bf16 %v981_v39, %v981_v39  ;;  %v1549_v46 = vpack.c.bf16 %v1013_v40, %v1013_v40  ;;  %v918_v47 = vadd.f32 %v1865_v19, %v847_v41  ;;  %v950_v48 = vadd.f32 %v1865_v19, %v879_v42 }
 0x12e   :  { %v610_v49 = vpop.f32.mrf.mxu0  ;;  %v738_v50 = vpop.f32.mrf.mxu1 }
 0x12f   :  { %1302 = vst.msk [vmem:[%s2255_s4 + $0x18] sm:$0xf] %vm1295_vm0, %v1517_v45  ;;  %1334 = vst.msk [vmem:[%s2255_s4 + $0x98] sm:$0xf] %vm1295_vm0, %v1549_v46  ;;  %v982_v51 = vmax.f32 %v918_v47, 0.0  ;;  %v1014_v52 = vmax.f32 %v950_v48, 0.0  ;;  %v848_v53 = vmul.f32 %v1860_v17, %v610_v49  ;;  %v880_v54 = vmul.f32 %v1860_v17, %v738_v50 }
 0x130   :  { %v612_v55 = vpop.f32.mrf.mxu0  ;;  %v740_v56 = vpop.f32.mrf.mxu1 }
 0x131   :  { %v1518_v57 = vpack.c.bf16 %v982_v51, %v982_v51  ;;  %v1550_v58 = vpack.c.bf16 %v1014_v52, %v1014_v52  ;;  %v919_v59 = vadd.f32 %v1865_v19, %v848_v53  ;;  %v951_v60 = vadd.f32 %v1865_v19, %v880_v54 }
 0x132   :  { %v613_v61 = vpop.f32.mrf.mxu0  ;;  %v741_v62 = vpop.f32.mrf.mxu1 }
 0x133   :  { %1303 = vst.msk [vmem:[%s2255_s4 + $0x1c] sm:$0xf] %vm1295_vm0, %v1518_v57  ;;  %1335 = vst.msk [vmem:[%s2255_s4 + $0x9c] sm:$0xf] %vm1295_vm0, %v1550_v58  ;;  %v983_v63 = vmax.f32 %v919_v59, 0.0  ;;  %v1015_v0 = vmax.f32 %v951_v60, 0.0  ;;  %v849_v1 = vmul.f32 %v1860_v17, %v613_v61  ;;  %v881_v2 = vmul.f32 %v1860_v17, %v741_v62 }
 0x134   :  { %v615_v3 = vpop.f32.mrf.mxu0  ;;  %v743_v4 = vpop.f32.mrf.mxu1 }
 0x135   :  { %v1519_v5 = vpack.c.bf16 %v983_v63, %v983_v63  ;;  %v1551_v6 = vpack.c.bf16 %v1015_v0, %v1015_v0  ;;  %v920_v7 = vadd.f32 %v1865_v19, %v849_v1  ;;  %v952_v8 = vadd.f32 %v1865_v19, %v881_v2 }
 0x136   :  { %v618_v9 = vpop.f32.mrf.mxu0  ;;  %v746_v10 = vpop.f32.mrf.mxu1 }
 0x137   :  { %1304 = vst.msk [vmem:[%s2255_s4 + $0x20] sm:$0xf] %vm1295_vm0, %v1519_v5  ;;  %1336 = vst.msk [vmem:[%s2255_s4 + $0xa0] sm:$0xf] %vm1295_vm0, %v1551_v6  ;;  %v984_v11 = vmax.f32 %v920_v7, 0.0  ;;  %v1016_v12 = vmax.f32 %v952_v8, 0.0  ;;  %v850_v13 = vmul.f32 %v1860_v17, %v618_v9  ;;  %v882_v14 = vmul.f32 %v1860_v17, %v746_v10 }
 0x138   :  { %v620_v15 = vpop.f32.mrf.mxu0  ;;  %v748_v16 = vpop.f32.mrf.mxu1 }
 0x139   :  { %v1520_v18 = vpack.c.bf16 %v984_v11, %v984_v11  ;;  %v1552_v20 = vpack.c.bf16 %v1016_v12, %v1016_v12  ;;  %v921_v21 = vadd.f32 %v1865_v19, %v850_v13  ;;  %v953_v22 = vadd.f32 %v1865_v19, %v882_v14 }
 0x13a   :  { %v621_v23 = vpop.f32.mrf.mxu0  ;;  %v749_v24 = vpop.f32.mrf.mxu1 }
 0x13b   :  { %1305 = vst.msk [vmem:[%s2255_s4 + $0x24] sm:$0xf] %vm1295_vm0, %v1520_v18  ;;  %1337 = vst.msk [vmem:[%s2255_s4 + $0xa4] sm:$0xf] %vm1295_vm0, %v1552_v20  ;;  %v985_v25 = vmax.f32 %v921_v21, 0.0  ;;  %v1017_v26 = vmax.f32 %v953_v22, 0.0  ;;  %v851_v27 = vmul.f32 %v1860_v17, %v621_v23  ;;  %v883_v28 = vmul.f32 %v1860_v17, %v749_v24 }
 0x13c   :  { %v623_v29 = vpop.f32.mrf.mxu0  ;;  %v751_v30 = vpop.f32.mrf.mxu1 }
 0x13d   :  { %v1521_v31 = vpack.c.bf16 %v985_v25, %v985_v25  ;;  %v1553_v32 = vpack.c.bf16 %v1017_v26, %v1017_v26  ;;  %v922_v33 = vadd.f32 %v1865_v19, %v851_v27  ;;  %v954_v34 = vadd.f32 %v1865_v19, %v883_v28 }
 0x13e   :  { %v626_v35 = vpop.f32.mrf.mxu0  ;;  %v754_v36 = vpop.f32.mrf.mxu1 }
 0x13f   :  { %1306 = vst.msk [vmem:[%s2255_s4 + $0x28] sm:$0xf] %vm1295_vm0, %v1521_v31  ;;  %1338 = vst.msk [vmem:[%s2255_s4 + $0xa8] sm:$0xf] %vm1295_vm0, %v1553_v32  ;;  %v986_v37 = vmax.f32 %v922_v33, 0.0  ;;  %v1018_v38 = vmax.f32 %v954_v34, 0.0  ;;  %v852_v39 = vmul.f32 %v1860_v17, %v626_v35  ;;  %v884_v40 = vmul.f32 %v1860_v17, %v754_v36 }
 0x140   :  { %v628_v41 = vpop.f32.mrf.mxu0  ;;  %v756_v42 = vpop.f32.mrf.mxu1 }
 0x141   :  { %v1522_v43 = vpack.c.bf16 %v986_v37, %v986_v37  ;;  %v1554_v44 = vpack.c.bf16 %v1018_v38, %v1018_v38  ;;  %v923_v45 = vadd.f32 %v1865_v19, %v852_v39  ;;  %v955_v46 = vadd.f32 %v1865_v19, %v884_v40 }
 0x142   :  { %v629_v47 = vpop.f32.mrf.mxu0  ;;  %v757_v48 = vpop.f32.mrf.mxu1 }
 0x143   :  { %1307 = vst.msk [vmem:[%s2255_s4 + $0x2c] sm:$0xf] %vm1295_vm0, %v1522_v43  ;;  %1339 = vst.msk [vmem:[%s2255_s4 + $0xac] sm:$0xf] %vm1295_vm0, %v1554_v44  ;;  %v987_v49 = vmax.f32 %v923_v45, 0.0  ;;  %v1019_v50 = vmax.f32 %v955_v46, 0.0  ;;  %v853_v51 = vmul.f32 %v1860_v17, %v629_v47  ;;  %v885_v52 = vmul.f32 %v1860_v17, %v757_v48 }
 0x144   :  { %v631_v53 = vpop.f32.mrf.mxu0  ;;  %v759_v54 = vpop.f32.mrf.mxu1 }
 0x145   :  { %v1523_v55 = vpack.c.bf16 %v987_v49, %v987_v49  ;;  %v1555_v56 = vpack.c.bf16 %v1019_v50, %v1019_v50  ;;  %v924_v57 = vadd.f32 %v1865_v19, %v853_v51  ;;  %v956_v58 = vadd.f32 %v1865_v19, %v885_v52 }
 0x146   :  { %v634_v59 = vpop.f32.mrf.mxu0  ;;  %v762_v60 = vpop.f32.mrf.mxu1 }
 0x147   :  { %1308 = vst.msk [vmem:[%s2255_s4 + $0x30] sm:$0xf] %vm1295_vm0, %v1523_v55  ;;  %1340 = vst.msk [vmem:[%s2255_s4 + $0xb0] sm:$0xf] %vm1295_vm0, %v1555_v56  ;;  %v988_v61 = vmax.f32 %v924_v57, 0.0  ;;  %v1020_v62 = vmax.f32 %v956_v58, 0.0  ;;  %v854_v63 = vmul.f32 %v1860_v17, %v634_v59  ;;  %v886_v0 = vmul.f32 %v1860_v17, %v762_v60 }
 0x148   :  { %v636_v1 = vpop.f32.mrf.mxu0  ;;  %v764_v2 = vpop.f32.mrf.mxu1 }
 0x149   :  { %v1524_v3 = vpack.c.bf16 %v988_v61, %v988_v61  ;;  %v1556_v4 = vpack.c.bf16 %v1020_v62, %v1020_v62  ;;  %v925_v5 = vadd.f32 %v1865_v19, %v854_v63  ;;  %v957_v6 = vadd.f32 %v1865_v19, %v886_v0 }
 0x14a   :  { %v637_v7 = vpop.f32.mrf.mxu0  ;;  %v765_v8 = vpop.f32.mrf.mxu1 }
 0x14b   :  { %1309 = vst.msk [vmem:[%s2255_s4 + $0x34] sm:$0xf] %vm1295_vm0, %v1524_v3  ;;  %1341 = vst.msk [vmem:[%s2255_s4 + $0xb4] sm:$0xf] %vm1295_vm0, %v1556_v4  ;;  %v989_v9 = vmax.f32 %v925_v5, 0.0  ;;  %v1021_v10 = vmax.f32 %v957_v6, 0.0  ;;  %v855_v11 = vmul.f32 %v1860_v17, %v637_v7  ;;  %v887_v12 = vmul.f32 %v1860_v17, %v765_v8 }
 0x14c   :  { %v639_v13 = vpop.f32.mrf.mxu0  ;;  %v767_v14 = vpop.f32.mrf.mxu1 }
 0x14d   :  { %v1525_v15 = vpack.c.bf16 %v989_v9, %v989_v9  ;;  %v1557_v16 = vpack.c.bf16 %v1021_v10, %v1021_v10  ;;  %v926_v18 = vadd.f32 %v1865_v19, %v855_v11  ;;  %v958_v20 = vadd.f32 %v1865_v19, %v887_v12 }
 0x14e   :  { %v642_v21 = vpop.f32.mrf.mxu0  ;;  %v770_v22 = vpop.f32.mrf.mxu1 }
 0x14f   :  { %1310 = vst.msk [vmem:[%s2255_s4 + $0x38] sm:$0xf] %vm1295_vm0, %v1525_v15  ;;  %1342 = vst.msk [vmem:[%s2255_s4 + $0xb8] sm:$0xf] %vm1295_vm0, %v1557_v16  ;;  %v990_v23 = vmax.f32 %v926_v18, 0.0  ;;  %v1022_v24 = vmax.f32 %v958_v20, 0.0  ;;  %v856_v25 = vmul.f32 %v1860_v17, %v642_v21  ;;  %v888_v26 = vmul.f32 %v1860_v17, %v770_v22 }
 0x150   :  { %v644_v27 = vpop.f32.mrf.mxu0  ;;  %v772_v28 = vpop.f32.mrf.mxu1 }
 0x151   :  { %v1526_v29 = vpack.c.bf16 %v990_v23, %v990_v23  ;;  %v1558_v30 = vpack.c.bf16 %v1022_v24, %v1022_v24  ;;  %v927_v31 = vadd.f32 %v1865_v19, %v856_v25  ;;  %v959_v32 = vadd.f32 %v1865_v19, %v888_v26 }
 0x152   :  { %v645_v33 = vpop.f32.mrf.mxu0  ;;  %v773_v34 = vpop.f32.mrf.mxu1 }
 0x153   :  { %1311 = vst.msk [vmem:[%s2255_s4 + $0x3c] sm:$0xf] %vm1295_vm0, %v1526_v29  ;;  %1343 = vst.msk [vmem:[%s2255_s4 + $0xbc] sm:$0xf] %vm1295_vm0, %v1558_v30  ;;  %v991_v35 = vmax.f32 %v927_v31, 0.0  ;;  %v1023_v36 = vmax.f32 %v959_v32, 0.0  ;;  %v857_v37 = vmul.f32 %v1860_v17, %v645_v33  ;;  %v889_v38 = vmul.f32 %v1860_v17, %v773_v34 }
 0x154   :  { %v647_v39 = vpop.f32.mrf.mxu0  ;;  %v775_v40 = vpop.f32.mrf.mxu1 }
 0x155   :  { %v1527_v41 = vpack.c.bf16 %v991_v35, %v991_v35  ;;  %v1559_v42 = vpack.c.bf16 %v1023_v36, %v1023_v36  ;;  %v928_v43 = vadd.f32 %v1865_v19, %v857_v37  ;;  %v960_v44 = vadd.f32 %v1865_v19, %v889_v38 }
 0x156   :  { %v650_v45 = vpop.f32.mrf.mxu0  ;;  %v778_v46 = vpop.f32.mrf.mxu1 }
 0x157   :  { %1312 = vst.msk [vmem:[%s2255_s4 + $0x40] sm:$0xf] %vm1295_vm0, %v1527_v41  ;;  %1344 = vst.msk [vmem:[%s2255_s4 + $0xc0] sm:$0xf] %vm1295_vm0, %v1559_v42  ;;  %v992_v47 = vmax.f32 %v928_v43, 0.0  ;;  %v1024_v48 = vmax.f32 %v960_v44, 0.0  ;;  %v858_v49 = vmul.f32 %v1860_v17, %v650_v45  ;;  %v890_v50 = vmul.f32 %v1860_v17, %v778_v46 }
 0x158   :  { %v652_v51 = vpop.f32.mrf.mxu0  ;;  %v780_v52 = vpop.f32.mrf.mxu1 }
 0x159   :  { %v1528_v53 = vpack.c.bf16 %v992_v47, %v992_v47  ;;  %v1560_v54 = vpack.c.bf16 %v1024_v48, %v1024_v48  ;;  %v929_v55 = vadd.f32 %v1865_v19, %v858_v49  ;;  %v961_v56 = vadd.f32 %v1865_v19, %v890_v50 }
 0x15a   :  { %v653_v57 = vpop.f32.mrf.mxu0  ;;  %v781_v58 = vpop.f32.mrf.mxu1 }
 0x15b   :  { %1313 = vst.msk [vmem:[%s2255_s4 + $0x44] sm:$0xf] %vm1295_vm0, %v1528_v53  ;;  %1345 = vst.msk [vmem:[%s2255_s4 + $0xc4] sm:$0xf] %vm1295_vm0, %v1560_v54  ;;  %v993_v59 = vmax.f32 %v929_v55, 0.0  ;;  %v1025_v60 = vmax.f32 %v961_v56, 0.0  ;;  %v859_v61 = vmul.f32 %v1860_v17, %v653_v57  ;;  %v891_v62 = vmul.f32 %v1860_v17, %v781_v58 }
 0x15c   :  { %v655_v63 = vpop.f32.mrf.mxu0  ;;  %v783_v0 = vpop.f32.mrf.mxu1 }
 0x15d   :  { %v1529_v1 = vpack.c.bf16 %v993_v59, %v993_v59  ;;  %v1561_v2 = vpack.c.bf16 %v1025_v60, %v1025_v60  ;;  %v930_v3 = vadd.f32 %v1865_v19, %v859_v61  ;;  %v962_v4 = vadd.f32 %v1865_v19, %v891_v62 }
 0x15e   :  { %v658_v5 = vpop.f32.mrf.mxu0  ;;  %v786_v6 = vpop.f32.mrf.mxu1 }
 0x15f   :  { %1314 = vst.msk [vmem:[%s2255_s4 + $0x48] sm:$0xf] %vm1295_vm0, %v1529_v1  ;;  %1346 = vst.msk [vmem:[%s2255_s4 + $0xc8] sm:$0xf] %vm1295_vm0, %v1561_v2  ;;  %v994_v7 = vmax.f32 %v930_v3, 0.0  ;;  %v1026_v8 = vmax.f32 %v962_v4, 0.0  ;;  %v860_v9 = vmul.f32 %v1860_v17, %v658_v5  ;;  %v892_v10 = vmul.f32 %v1860_v17, %v786_v6 }
 0x160   :  { %v660_v11 = vpop.f32.mrf.mxu0  ;;  %v788_v12 = vpop.f32.mrf.mxu1 }
 0x161   :  { %v1530_v13 = vpack.c.bf16 %v994_v7, %v994_v7  ;;  %v1562_v14 = vpack.c.bf16 %v1026_v8, %v1026_v8  ;;  %v931_v15 = vadd.f32 %v1865_v19, %v860_v9  ;;  %v963_v16 = vadd.f32 %v1865_v19, %v892_v10 }
 0x162   :  { %v661_v18 = vpop.f32.mrf.mxu0  ;;  %v789_v20 = vpop.f32.mrf.mxu1 }
 0x163   :  { %1315 = vst.msk [vmem:[%s2255_s4 + $0x4c] sm:$0xf] %vm1295_vm0, %v1530_v13  ;;  %1347 = vst.msk [vmem:[%s2255_s4 + $0xcc] sm:$0xf] %vm1295_vm0, %v1562_v14  ;;  %v995_v21 = vmax.f32 %v931_v15, 0.0  ;;  %v1027_v22 = vmax.f32 %v963_v16, 0.0  ;;  %v861_v23 = vmul.f32 %v1860_v17, %v661_v18  ;;  %v893_v24 = vmul.f32 %v1860_v17, %v789_v20 }
 0x164   :  { %v663_v25 = vpop.f32.mrf.mxu0  ;;  %v791_v26 = vpop.f32.mrf.mxu1 }
 0x165   :  { %v1531_v27 = vpack.c.bf16 %v995_v21, %v995_v21  ;;  %v1563_v28 = vpack.c.bf16 %v1027_v22, %v1027_v22  ;;  %v932_v29 = vadd.f32 %v1865_v19, %v861_v23  ;;  %v964_v30 = vadd.f32 %v1865_v19, %v893_v24 }
 0x166   :  { %v666_v31 = vpop.f32.mrf.mxu0  ;;  %v794_v32 = vpop.f32.mrf.mxu1 }
 0x167   :  { %1316 = vst.msk [vmem:[%s2255_s4 + $0x50] sm:$0xf] %vm1295_vm0, %v1531_v27  ;;  %1348 = vst.msk [vmem:[%s2255_s4 + $0xd0] sm:$0xf] %vm1295_vm0, %v1563_v28  ;;  %v996_v33 = vmax.f32 %v932_v29, 0.0  ;;  %v1028_v34 = vmax.f32 %v964_v30, 0.0  ;;  %v862_v35 = vmul.f32 %v1860_v17, %v666_v31  ;;  %v894_v36 = vmul.f32 %v1860_v17, %v794_v32 }
 0x168   :  { %v668_v37 = vpop.f32.mrf.mxu0  ;;  %v796_v38 = vpop.f32.mrf.mxu1 }
 0x169   :  { %v1532_v39 = vpack.c.bf16 %v996_v33, %v996_v33  ;;  %v1564_v40 = vpack.c.bf16 %v1028_v34, %v1028_v34  ;;  %v933_v41 = vadd.f32 %v1865_v19, %v862_v35  ;;  %v965_v42 = vadd.f32 %v1865_v19, %v894_v36 }
 0x16a   :  { %v669_v43 = vpop.f32.mrf.mxu0  ;;  %v797_v44 = vpop.f32.mrf.mxu1 }
 0x16b   :  { %1317 = vst.msk [vmem:[%s2255_s4 + $0x54] sm:$0xf] %vm1295_vm0, %v1532_v39  ;;  %1349 = vst.msk [vmem:[%s2255_s4 + $0xd4] sm:$0xf] %vm1295_vm0, %v1564_v40  ;;  %v997_v45 = vmax.f32 %v933_v41, 0.0  ;;  %v1029_v46 = vmax.f32 %v965_v42, 0.0  ;;  %v863_v47 = vmul.f32 %v1860_v17, %v669_v43  ;;  %v895_v48 = vmul.f32 %v1860_v17, %v797_v44 }
 0x16c   :  { %v671_v49 = vpop.f32.mrf.mxu0  ;;  %v799_v50 = vpop.f32.mrf.mxu1 }
 0x16d   :  { %v1533_v51 = vpack.c.bf16 %v997_v45, %v997_v45  ;;  %v1565_v52 = vpack.c.bf16 %v1029_v46, %v1029_v46  ;;  %v934_v53 = vadd.f32 %v1865_v19, %v863_v47  ;;  %v966_v54 = vadd.f32 %v1865_v19, %v895_v48 }
 0x16e   :  { %v674_v55 = vpop.f32.mrf.mxu0  ;;  %v802_v56 = vpop.f32.mrf.mxu1 }
 0x16f   :  { %1318 = vst.msk [vmem:[%s2255_s4 + $0x58] sm:$0xf] %vm1295_vm0, %v1533_v51  ;;  %1350 = vst.msk [vmem:[%s2255_s4 + $0xd8] sm:$0xf] %vm1295_vm0, %v1565_v52  ;;  %v998_v57 = vmax.f32 %v934_v53, 0.0  ;;  %v1030_v58 = vmax.f32 %v966_v54, 0.0  ;;  %v864_v59 = vmul.f32 %v1860_v17, %v674_v55  ;;  %v896_v60 = vmul.f32 %v1860_v17, %v802_v56 }
 0x170   :  { %v676_v61 = vpop.f32.mrf.mxu0  ;;  %v804_v62 = vpop.f32.mrf.mxu1 }
 0x171   :  { %v1534_v63 = vpack.c.bf16 %v998_v57, %v998_v57  ;;  %v1566_v0 = vpack.c.bf16 %v1030_v58, %v1030_v58  ;;  %v935_v1 = vadd.f32 %v1865_v19, %v864_v59  ;;  %v967_v2 = vadd.f32 %v1865_v19, %v896_v60 }
 0x172   :  { %v677_v3 = vpop.f32.mrf.mxu0  ;;  %v805_v4 = vpop.f32.mrf.mxu1 }
 0x173   :  { %1319 = vst.msk [vmem:[%s2255_s4 + $0x5c] sm:$0xf] %vm1295_vm0, %v1534_v63  ;;  %1351 = vst.msk [vmem:[%s2255_s4 + $0xdc] sm:$0xf] %vm1295_vm0, %v1566_v0  ;;  %v999_v5 = vmax.f32 %v935_v1, 0.0  ;;  %v1031_v6 = vmax.f32 %v967_v2, 0.0  ;;  %v865_v7 = vmul.f32 %v1860_v17, %v677_v3  ;;  %v897_v8 = vmul.f32 %v1860_v17, %v805_v4 }
 0x174   :  { %v679_v9 = vpop.f32.mrf.mxu0  ;;  %v807_v10 = vpop.f32.mrf.mxu1 }
 0x175   :  { %v1535_v11 = vpack.c.bf16 %v999_v5, %v999_v5  ;;  %v1567_v12 = vpack.c.bf16 %v1031_v6, %v1031_v6  ;;  %v936_v13 = vadd.f32 %v1865_v19, %v865_v7  ;;  %v968_v14 = vadd.f32 %v1865_v19, %v897_v8 }
 0x176   :  { %v682_v15 = vpop.f32.mrf.mxu0  ;;  %v810_v16 = vpop.f32.mrf.mxu1 }
 0x177   :  { %1320 = vst.msk [vmem:[%s2255_s4 + $0x60] sm:$0xf] %vm1295_vm0, %v1535_v11  ;;  %1352 = vst.msk [vmem:[%s2255_s4 + $0xe0] sm:$0xf] %vm1295_vm0, %v1567_v12  ;;  %v1000_v18 = vmax.f32 %v936_v13, 0.0  ;;  %v1032_v20 = vmax.f32 %v968_v14, 0.0  ;;  %v866_v21 = vmul.f32 %v1860_v17, %v682_v15  ;;  %v898_v22 = vmul.f32 %v1860_v17, %v810_v16 }
 0x178   :  { %v684_v23 = vpop.f32.mrf.mxu0  ;;  %v812_v24 = vpop.f32.mrf.mxu1 }
 0x179   :  { %v1536_v25 = vpack.c.bf16 %v1000_v18, %v1000_v18  ;;  %v1568_v26 = vpack.c.bf16 %v1032_v20, %v1032_v20  ;;  %v937_v27 = vadd.f32 %v1865_v19, %v866_v21  ;;  %v969_v28 = vadd.f32 %v1865_v19, %v898_v22 }
 0x17a   :  { %v685_v29 = vpop.f32.mrf.mxu0  ;;  %v813_v30 = vpop.f32.mrf.mxu1 }
 0x17b   :  { %1321 = vst.msk [vmem:[%s2255_s4 + $0x64] sm:$0xf] %vm1295_vm0, %v1536_v25  ;;  %1353 = vst.msk [vmem:[%s2255_s4 + $0xe4] sm:$0xf] %vm1295_vm0, %v1568_v26  ;;  %v1001_v31 = vmax.f32 %v937_v27, 0.0  ;;  %v1033_v32 = vmax.f32 %v969_v28, 0.0  ;;  %v867_v33 = vmul.f32 %v1860_v17, %v685_v29  ;;  %v899_v34 = vmul.f32 %v1860_v17, %v813_v30 }
 0x17c   :  { %v687_v35 = vpop.f32.mrf.mxu0  ;;  %v815_v36 = vpop.f32.mrf.mxu1 }
 0x17d   :  { %v1537_v37 = vpack.c.bf16 %v1001_v31, %v1001_v31  ;;  %v1569_v38 = vpack.c.bf16 %v1033_v32, %v1033_v32  ;;  %v938_v39 = vadd.f32 %v1865_v19, %v867_v33  ;;  %v970_v40 = vadd.f32 %v1865_v19, %v899_v34 }
 0x17e   :  { %v690_v41 = vpop.f32.mrf.mxu0  ;;  %v818_v42 = vpop.f32.mrf.mxu1 }
 0x17f   :  { %1322 = vst.msk [vmem:[%s2255_s4 + $0x68] sm:$0xf] %vm1295_vm0, %v1537_v37  ;;  %1354 = vst.msk [vmem:[%s2255_s4 + $0xe8] sm:$0xf] %vm1295_vm0, %v1569_v38  ;;  %v1002_v43 = vmax.f32 %v938_v39, 0.0  ;;  %v1034_v44 = vmax.f32 %v970_v40, 0.0  ;;  %v868_v45 = vmul.f32 %v1860_v17, %v690_v41  ;;  %v900_v46 = vmul.f32 %v1860_v17, %v818_v42 }
 0x180   :  { %v692_v47 = vpop.f32.mrf.mxu0  ;;  %v820_v48 = vpop.f32.mrf.mxu1 }
 0x181   :  { %v1538_v49 = vpack.c.bf16 %v1002_v43, %v1002_v43  ;;  %v1570_v50 = vpack.c.bf16 %v1034_v44, %v1034_v44  ;;  %v939_v51 = vadd.f32 %v1865_v19, %v868_v45  ;;  %v971_v52 = vadd.f32 %v1865_v19, %v900_v46 }
 0x182   :  { %v693_v53 = vpop.f32.mrf.mxu0  ;;  %v821_v54 = vpop.f32.mrf.mxu1 }
 0x183   :  { %1323 = vst.msk [vmem:[%s2255_s4 + $0x6c] sm:$0xf] %vm1295_vm0, %v1538_v49  ;;  %1355 = vst.msk [vmem:[%s2255_s4 + $0xec] sm:$0xf] %vm1295_vm0, %v1570_v50  ;;  %v1003_v55 = vmax.f32 %v939_v51, 0.0  ;;  %v1035_v56 = vmax.f32 %v971_v52, 0.0  ;;  %v869_v57 = vmul.f32 %v1860_v17, %v693_v53  ;;  %v901_v58 = vmul.f32 %v1860_v17, %v821_v54 }
 0x184   :  { %v695_v59 = vpop.f32.mrf.mxu0  ;;  %v823_v60 = vpop.f32.mrf.mxu1 }
 0x185   :  { %v1539_v61 = vpack.c.bf16 %v1003_v55, %v1003_v55  ;;  %v1571_v62 = vpack.c.bf16 %v1035_v56, %v1035_v56  ;;  %v940_v63 = vadd.f32 %v1865_v19, %v869_v57  ;;  %v972_v0 = vadd.f32 %v1865_v19, %v901_v58 }
 0x186   :  { %v698_v1 = vpop.f32.mrf.mxu0  ;;  %v826_v2 = vpop.f32.mrf.mxu1 }
 0x187   :  { %1324 = vst.msk [vmem:[%s2255_s4 + $0x70] sm:$0xf] %vm1295_vm0, %v1539_v61  ;;  %1356 = vst.msk [vmem:[%s2255_s4 + $0xf0] sm:$0xf] %vm1295_vm0, %v1571_v62  ;;  %v1004_v3 = vmax.f32 %v940_v63, 0.0  ;;  %v1036_v4 = vmax.f32 %v972_v0, 0.0  ;;  %v870_v5 = vmul.f32 %v1860_v17, %v698_v1  ;;  %v902_v6 = vmul.f32 %v1860_v17, %v826_v2 }
 0x188   :  { %v700_v7 = vpop.f32.mrf.mxu0  ;;  %v828_v8 = vpop.f32.mrf.mxu1 }
 0x189   :  { %v1540_v9 = vpack.c.bf16 %v1004_v3, %v1004_v3  ;;  %v1572_v10 = vpack.c.bf16 %v1036_v4, %v1036_v4  ;;  %v941_v11 = vadd.f32 %v1865_v19, %v870_v5  ;;  %v973_v12 = vadd.f32 %v1865_v19, %v902_v6 }
 0x18a   :  { %v701_v13 = vpop.f32.mrf.mxu0  ;;  %v829_v14 = vpop.f32.mrf.mxu1 }
 0x18b   :  { %1325 = vst.msk [vmem:[%s2255_s4 + $0x74] sm:$0xf] %vm1295_vm0, %v1540_v9  ;;  %1357 = vst.msk [vmem:[%s2255_s4 + $0xf4] sm:$0xf] %vm1295_vm0, %v1572_v10  ;;  %v1005_v15 = vmax.f32 %v941_v11, 0.0  ;;  %v1037_v16 = vmax.f32 %v973_v12, 0.0  ;;  %v871_v18 = vmul.f32 %v1860_v17, %v701_v13  ;;  %v903_v20 = vmul.f32 %v1860_v17, %v829_v14 }
 0x18c   :  { %v703_v21 = vpop.f32.mrf.mxu0  ;;  %v831_v22 = vpop.f32.mrf.mxu1 }
 0x18d   :  { %v1541_v23 = vpack.c.bf16 %v1005_v15, %v1005_v15  ;;  %v1573_v24 = vpack.c.bf16 %v1037_v16, %v1037_v16  ;;  %v942_v25 = vadd.f32 %v1865_v19, %v871_v18  ;;  %v974_v26 = vadd.f32 %v1865_v19, %v903_v20 }
 0x18f   :  { %1326 = vst.msk [vmem:[%s2255_s4 + $0x78] sm:$0xf] %vm1295_vm0, %v1541_v23  ;;  %1358 = vst.msk [vmem:[%s2255_s4 + $0xf8] sm:$0xf] %vm1295_vm0, %v1573_v24  ;;  %v1006_v27 = vmax.f32 %v942_v25, 0.0  ;;  %v1038_v17 = vmax.f32 %v974_v26, 0.0 }
 0x191   :  { %v1542_v28 = vpack.c.bf16 %v1006_v27, %v1006_v27  ;;  %v1574_v29 = vpack.c.bf16 %v1038_v17, %v1038_v17 }
 0x193   :  { %1327 = vst.msk [vmem:[%s2255_s4 + $0x7c] sm:$0xf] %vm1295_vm0, %v1542_v28  ;;  %1359 = vst.msk [vmem:[%s2255_s4 + $0xfc] sm:$0xf] %vm1295_vm0, %v1574_v29 }
 0x194   :  { %1364 = vsyncpa [#allocation3], 1 }

</bundles_post_ra>
